<compile_context>
chip_gen: v7x
topology: tpu7x:2x2x1
jax: 0.10.0
libtpu: 0.0.40
codegen_flags: <defaults>
</compile_context>

<pallas_src>
import functools

import jax
import jax.numpy as jnp
from jax.experimental import pallas as pl
from jax.experimental.pallas import tpu as pltpu


_LANE = 128
_RESIDENT_BYTES_LIMIT = 8 * 1024 * 1024   # keep bf16 A_hat resident up to ~2048 nodes
_VMEM_LIMIT_BYTES = 32 * 1024 * 1024      # safe on v5e/v6e/v7x (well under 64 MiB physical)


def _round_up(x, m):
    return (x + m - 1) // m * m


# ---------------------------------------------------------------------------
# Path 1: whole A_hat resident in VMEM, all propagation steps in one kernel.
# ---------------------------------------------------------------------------
def _ppr_resident_kernel(a_ref, h_ref, o_ref, *, alpha, n_propagation):
    a = a_ref[...]            # bf16, pre-scaled by (1 - alpha) in the wrapper
    h = h_ref[...]            # f32
    ah = alpha * h            # loop-invariant teleport term (hoisted)

    def body(_, logits):
        return jnp.dot(a, logits.astype(jnp.bfloat16),
                       preferred_element_type=jnp.float32) + ah

    out = jax.lax.fori_loop(0, n_propagation, body, h, unroll=True)
    o_ref[...] = out.astype(o_ref.dtype)


def _propagate_resident(a_scaled_bf16, h_pad, alpha, n_propagation):
    n_pad, c_pad = h_pad.shape
    kernel = functools.partial(_ppr_resident_kernel, alpha=float(alpha),
                               n_propagation=int(n_propagation))
    return pl.pallas_call(
        kernel,
        out_shape=jax.ShapeDtypeStruct((n_pad, c_pad), h_pad.dtype),
        in_specs=[
            pl.BlockSpec((n_pad, n_pad), lambda: (0, 0),
                         memory_space=pltpu.MemorySpace.VMEM),
            pl.BlockSpec((n_pad, c_pad), lambda: (0, 0),
                         memory_space=pltpu.MemorySpace.VMEM),
        ],
        out_specs=pl.BlockSpec((n_pad, c_pad), lambda: (0, 0),
                               memory_space=pltpu.MemorySpace.VMEM),
        compiler_params=pltpu.CompilerParams(
            vmem_limit_bytes=_VMEM_LIMIT_BYTES),
        cost_estimate=pl.CostEstimate(
            flops=2 * n_pad * n_pad * c_pad * int(n_propagation),
            transcendentals=0,
            bytes_accessed=n_pad * n_pad * 2 + 2 * n_pad * c_pad * 4),
    )(a_scaled_bf16, h_pad)


# ---------------------------------------------------------------------------
# Path 2: tiled / streamed matmul, one pallas_call per propagation step.
# ---------------------------------------------------------------------------
def _ppr_step_kernel(a_ref, x_ref, ah_ref, o_ref, acc_ref):
    @pl.when(pl.program_id(1) == 0)
    def _():
        acc_ref[...] = jnp.zeros_like(acc_ref)

    acc_ref[...] += jnp.dot(a_ref[...], x_ref[...],
                            preferred_element_type=jnp.float32)

    @pl.when(pl.program_id(1) == pl.num_programs(1) - 1)
    def _():
        o_ref[...] = (acc_ref[...] + ah_ref[...]).astype(o_ref.dtype)


def _propagate_tiled(a_scaled_bf16, h_pad, alpha, n_propagation, *, tm=128, tk=128):
    n_pad, c_pad = h_pad.shape
    ah_pad = (alpha * h_pad).astype(jnp.float32)

    step = pl.pallas_call(
        _ppr_step_kernel,
        out_shape=jax.ShapeDtypeStruct((n_pad, c_pad), jnp.float32),
        grid_spec=pltpu.PrefetchScalarGridSpec(
            num_scalar_prefetch=0,
            grid=(n_pad // tm, n_pad // tk),
            in_specs=[
                pl.BlockSpec((tm, tk), lambda i, k: (i, k),
                             memory_space=pltpu.MemorySpace.VMEM),
                pl.BlockSpec((tk, c_pad), lambda i, k: (k, 0),
                             memory_space=pltpu.MemorySpace.VMEM),
                pl.BlockSpec((tm, c_pad), lambda i, k: (i, 0),
                             memory_space=pltpu.MemorySpace.VMEM),
            ],
            out_specs=pl.BlockSpec((tm, c_pad), lambda i, k: (i, 0),
                                   memory_space=pltpu.MemorySpace.VMEM),
            scratch_shapes=[pltpu.VMEM((tm, c_pad), jnp.float32)],
        ),
        compiler_params=pltpu.CompilerParams(
            dimension_semantics=("parallel", "arbitrary"),
            vmem_limit_bytes=_VMEM_LIMIT_BYTES),
        cost_estimate=pl.CostEstimate(
            flops=2 * n_pad * n_pad * c_pad,
            transcendentals=0,
            bytes_accessed=n_pad * n_pad * 2 + 3 * n_pad * c_pad * 4),
    )

    out = h_pad
    x = h_pad
    for _ in range(int(n_propagation)):
        out = step(a_scaled_bf16, x.astype(jnp.bfloat16), ah_pad)
        x = out
    return out


# ---------------------------------------------------------------------------
# Public wrapper (matches PowerIterationPageRank.forward semantics).
# ---------------------------------------------------------------------------
def power_iteration_pagerank(logits, a_hat_dense, *, dropout: float = 0.5,
                             alpha: float = 0.15, n_propagation: int = 5,
                             training: bool = False, force_tiled: bool = False):
    """Propagate logits with personalized PageRank power iteration."""
    # TODO(synk): training-mode sparse_dropout (Bernoulli mask of the propagated
    # values) is not implemented; eval-mode semantics (identity) are reproduced.
    del dropout, training
    n, c = logits.shape
    assert a_hat_dense.shape == (n, n)
    if int(n_propagation) == 0:
        return logits

    a_bytes_bf16 = n * n * 2
    use_tiled = force_tiled or a_bytes_bf16 > _RESIDENT_BYTES_LIMIT

    tile = 128
    c_pad = _round_up(c, _LANE)
    n_pad = _round_up(n, tile) if use_tiled else _round_up(n, 16)

    # Fold (1 - alpha) into A_hat once; cast to bf16 for the MXU.
    a_scaled = (1.0 - float(alpha)) * a_hat_dense.astype(jnp.float32)
    a_scaled = jnp.pad(a_scaled, ((0, n_pad - n), (0, n_pad - n))).astype(jnp.bfloat16)
    h_pad = jnp.pad(logits.astype(jnp.float32), ((0, n_pad - n), (0, c_pad - c)))

    if use_tiled:
        out = _propagate_tiled(a_scaled, h_pad, float(alpha), int(n_propagation),
                               tm=tile, tk=tile)
    else:
        out = _propagate_resident(a_scaled, h_pad, float(alpha), int(n_propagation))
    return out[:n, :c].astype(logits.dtype)


def _reference(logits, a_hat, alpha=0.15, n_propagation=5):
    h = logits
    out = logits
    for _ in range(n_propagation):
        out = (1.0 - alpha) * (a_hat @ out) + alpha * h
    return out


if __name__ == "__main__":
    key = jax.random.PRNGKey(0)
    k_logits, k_adj = jax.random.split(key)

    N, C = 256, 16  # nodes, classes

    # Local (per-node) logits.
    logits = jax.random.normal(k_logits, (N, C), dtype=jnp.float32)

    # Synthetic sparse adjacency -> symmetrically normalized dense A_hat
    # (deterministic; stands in for the torch.sparse input).
    mask = (jax.random.uniform(k_adj, (N, N)) < 0.05).astype(jnp.float32)
    adj = jnp.maximum(mask, mask.T)                      # symmetric
    adj = adj + jnp.eye(N, dtype=jnp.float32)            # add self-loops
    deg = jnp.sum(adj, axis=1)
    d_inv_sqrt = 1.0 / jnp.sqrt(deg)
    a_hat = adj * d_inv_sqrt[:, None] * d_inv_sqrt[None, :]

    alpha, n_prop = 0.15, 5

    # Small-graph path (resident A_hat, in-kernel unrolled loop).
    out_resident = power_iteration_pagerank(logits, a_hat, dropout=0.5,
                                            alpha=alpha, n_propagation=n_prop,
                                            training=False)
    # Large-graph path exercised at small size (tiled, gridded matmul per step).
    out_tiled = power_iteration_pagerank(logits, a_hat, dropout=0.5,
                                         alpha=alpha, n_propagation=n_prop,
                                         training=False, force_tiled=True)
    out_resident, out_tiled = jax.block_until_ready((out_resident, out_tiled))

    ref = _reference(logits, a_hat, alpha=alpha, n_propagation=n_prop)

    assert out_resident.shape == (N, C)
    assert out_tiled.shape == (N, C)
    # bf16 A_hat / activations inside the kernel -> loosened tolerance vs f32 ref.
    assert jnp.allclose(out_resident, ref, atol=3e-2, rtol=3e-2)
    assert jnp.allclose(out_tiled, ref, atol=3e-2, rtol=3e-2)
    # Both paths perform the same bf16 math -> should agree tightly.
    assert jnp.allclose(out_resident, out_tiled, atol=1e-3, rtol=1e-3)

    print("KERNEL_OK")
</pallas_src>

<mosaic_0001>
module attributes {stable_mosaic.version = 11 : i64} {
  func.func @_ppr_resident_kernel(%arg0: memref<256x256xbf16, #tpu.memory_space<vmem>>, %arg1: memref<256x128xf32, #tpu.memory_space<vmem>>, %arg2: memref<256x128xf32, #tpu.memory_space<vmem>>) attributes {dimension_semantics = [], scalar_prefetch = 0 : i64, scratch_operands = 0 : i64, tpu.core_type = #tpu.core_type<tc>} {
    %c0 = arith.constant 0 : index
    %c0_0 = arith.constant 0 : index
    %0 = vector.load %arg0[%c0, %c0_0] : memref<256x256xbf16, #tpu.memory_space<vmem>>, vector<256x256xbf16>
    %c0_1 = arith.constant 0 : index
    %c0_2 = arith.constant 0 : index
    %1 = vector.load %arg1[%c0_1, %c0_2] : memref<256x128xf32, #tpu.memory_space<vmem>>, vector<256x128xf32>
    %cst = arith.constant 1.500000e-01 : f32
    %2 = vector.broadcast %cst : f32 to vector<256x128xf32>
    %3 = arith.mulf %2, %1 : vector<256x128xf32>
    %c0_i32 = arith.constant 0 : i32
    %4 = arith.truncf %1 : vector<256x128xf32> to vector<256x128xbf16>
    %cst_3 = arith.constant dense<0.000000e+00> : vector<256x128xf32>
    %5 = tpu.matmul %0, %4, %cst_3 {dimension_numbers = #tpu.dot_dimension_numbers<[1], [0], [0], [1], [0, 0, 1, 1], [], []>} : vector<256x256xbf16>, vector<256x128xbf16>, vector<256x128xf32> -> vector<256x128xf32>
    %6 = arith.addf %5, %3 : vector<256x128xf32>
    %c1_i32 = arith.constant 1 : i32
    %7 = arith.truncf %6 : vector<256x128xf32> to vector<256x128xbf16>
    %cst_4 = arith.constant dense<0.000000e+00> : vector<256x128xf32>
    %8 = tpu.matmul %0, %7, %cst_4 {dimension_numbers = #tpu.dot_dimension_numbers<[1], [0], [0], [1], [0, 0, 1, 1], [], []>} : vector<256x256xbf16>, vector<256x128xbf16>, vector<256x128xf32> -> vector<256x128xf32>
    %9 = arith.addf %8, %3 : vector<256x128xf32>
    %c2_i32 = arith.constant 2 : i32
    %10 = arith.truncf %9 : vector<256x128xf32> to vector<256x128xbf16>
    %cst_5 = arith.constant dense<0.000000e+00> : vector<256x128xf32>
    %11 = tpu.matmul %0, %10, %cst_5 {dimension_numbers = #tpu.dot_dimension_numbers<[1], [0], [0], [1], [0, 0, 1, 1], [], []>} : vector<256x256xbf16>, vector<256x128xbf16>, vector<256x128xf32> -> vector<256x128xf32>
    %12 = arith.addf %11, %3 : vector<256x128xf32>
    %c3_i32 = arith.constant 3 : i32
    %13 = arith.truncf %12 : vector<256x128xf32> to vector<256x128xbf16>
    %cst_6 = arith.constant dense<0.000000e+00> : vector<256x128xf32>
    %14 = tpu.matmul %0, %13, %cst_6 {dimension_numbers = #tpu.dot_dimension_numbers<[1], [0], [0], [1], [0, 0, 1, 1], [], []>} : vector<256x256xbf16>, vector<256x128xbf16>, vector<256x128xf32> -> vector<256x128xf32>
    %15 = arith.addf %14, %3 : vector<256x128xf32>
    %c4_i32 = arith.constant 4 : i32
    %16 = arith.truncf %15 : vector<256x128xf32> to vector<256x128xbf16>
    %cst_7 = arith.constant dense<0.000000e+00> : vector<256x128xf32>
    %17 = tpu.matmul %0, %16, %cst_7 {dimension_numbers = #tpu.dot_dimension_numbers<[1], [0], [0], [1], [0, 0, 1, 1], [], []>} : vector<256x256xbf16>, vector<256x128xbf16>, vector<256x128xf32> -> vector<256x128xf32>
    %18 = arith.addf %17, %3 : vector<256x128xf32>
    %c0_8 = arith.constant 0 : index
    %c0_9 = arith.constant 0 : index
    %19 = vector.load %arg2[%c0_8, %c0_9] : memref<256x128xf32, #tpu.memory_space<vmem>>, vector<256x128xf32>
    tpu.vector_store %arg2[%c0_8, %c0_9], %18 {strides = array<i32>} : memref<256x128xf32, #tpu.memory_space<vmem>>, vector<256x128xf32>,
    return
  }
}

</mosaic_0001>

<bundles_post_ra>
// kernel: tpu_custom_call.1
= control target key start
LH: loop header
LB: loop body
LE: loop exit
PB: predicated region body
PF: predicated region fallthrough
CT: control target
= control target key end

     0   :  { %7 = vsyncpa [#allocation3], 0  ;;  %s2915_s0 = inlined_call_operand.hbm [shape: bf16[256,256], index: 0, kind: input, shape index: {}]   ;;  %s2916_s1 = inlined_call_operand.hbm [shape: f32[256,128], index: 1, kind: input, shape index: {}]   ;;  %s2917_s2 = inlined_call_operand.hbm [shape: f32[256,128], index: 2, kind: output, shape index: {}]  }
   0x1   :  { %8 = vsyncpa [#allocation6], 0 }
   0x2   :  { %9 = vsyncpa [#allocation4], 0  ;;  %s1997_s9 = smov [#allocation2]   ;;  %s1925_s13 = scalar_lea.hbm %s2915_s0, 4096 }
   0x3   :  { %s15_s10 = sshll.u32 %s1997_s9, 4  ;;  %p1926_p0 = scmp.ne.s32.totalorder %s2915_s0, %s1925_s13  ;;  %s16_s10 = int_to_ptr.vmem [resolvable:$true] %s15_s10 }
   0x4   :  { %p1929_p1 = scmp.lt.u32.totalorder %s1925_s13, %s2915_s0 }
   0x6   :  { %p1931_p2 = pnand %p1929_p1, %p1926_p0 }
   0x8   :  { %1934 = shalt.err (!%p1931_p2)
}
   0x9   :  { %s1935_s18 = scalar_lea.vmem %s16_s10, 4096  ;;  %p1940_p4 = scmp.lt.s32.totalorder %s16_s10, %s16_s10 }
   0xa   :  { %p1936_p3 = scmp.ne.s32.totalorder %s16_s10, %s1935_s18  ;;  %p1941_p5 = scmp.lt.s32.totalorder %s1935_s18, %s1935_s18 }
   0xc   :  { %p1942_p6 = por %p1941_p5, %p1940_p4 }
   0xe   :  { %p1943_p7 = pnand %p1942_p6, %p1936_p3 }
  0x10   :  { %1946 = shalt.err (!%p1943_p7)
}
  0x11   :  { %s1998_s19 = smov 128   ;;  %s1999_s20 = smov 8  }
  0x12   :  { %21 = dma.hbm_to_vmem [thread:$0]  %s2915_s0, 4096, %s16_s10, [#allocation3], %s1998_s19, %s1998_s19, %s1999_s20  }
  0x13   :  { %s2000_s23 = smov [#allocation5]   ;;  %s1947_s27 = scalar_lea.hbm %s2916_s1, 4096 }
  0x14   :  { %s27_s24 = sshll.u32 %s2000_s23, 4  ;;  %p1948_p8 = scmp.ne.s32.totalorder %s2916_s1, %s1947_s27  ;;  %s28_s24 = int_to_ptr.vmem [resolvable:$true] %s27_s24 }
  0x15   :  { %p1951_p9 = scmp.lt.u32.totalorder %s1947_s27, %s2916_s1 }
  0x17   :  { %p1953_p10 = pnand %p1951_p9, %p1948_p8 }
  0x19   :  { %1956 = shalt.err (!%p1953_p10)
}
  0x1a   :  { %s1957_s4 = scalar_lea.vmem %s28_s24, 4096  ;;  %p1962_p12 = scmp.lt.s32.totalorder %s28_s24, %s28_s24 }
  0x1b   :  { %p1958_p11 = scmp.ne.s32.totalorder %s28_s24, %s1957_s4  ;;  %p1963_p13 = scmp.lt.s32.totalorder %s1957_s4, %s1957_s4 }
  0x1d   :  { %p1964_p0 = por %p1963_p13, %p1962_p12 }
  0x1f   :  { %p1965_p1 = pnand %p1964_p0, %p1958_p11 }
  0x21   :  { %1968 = shalt.err (!%p1965_p1)
}
  0x22   :  { %33 = dma.hbm_to_vmem [thread:$0]  %s2916_s1, 4096, %s28_s24, [#allocation6], %s1998_s19, %s1998_s19, %s1999_s20  }
  0x23   :  { %1991 = dma.done.wait [#allocation3], 4096  }
  0x24   :  { %1992 = vsyncadd [#allocation3], 4294963200 }
  0x25   :  { %1993 = dma.done.wait [#allocation6], 4096  }
  0x26   :  { %1994 = vsyncadd [#allocation6], 4294963200  ;;  %v2047_v0 = vld [vmem:[#allocation5 + $0x80] sm:$0xff]  ;;  %v2049_v1 = vld [vmem:[#allocation5 + $0x88] sm:$0xff]  ;;  %s2001_s1 = smov [#allocation7]  }
  0x27   :  { %v2051_v2 = vld [vmem:[#allocation5] sm:$0xff]  ;;  %v145_v3 = vpack.c.bf16 %v2049_v1, %v2047_v0  ;;  %v2055_v4 = vld [vmem:[#allocation5 + $0x8] sm:$0xff]  ;;  %v2057_v5 = vld [vmem:[#allocation5 + $0x90] sm:$0xff]  ;;  %s1219_s6 = sshll.u32 %s2001_s1, 4  ;;  %s1220_s6 = int_to_ptr.vmem [resolvable:$true] %s1219_s6 }
  0x28   :  { %v137_v6 = vpack.c.bf16 %v2055_v4, %v2051_v2  ;;  %v2061_v7 = vld [vmem:[#allocation5 + $0x98] sm:$0xff]  ;;  %v2063_v8 = vld [vmem:[#allocation5 + $0x10] sm:$0xff]  ;;  %v2069_v11 = vld [vmem:[#allocation5 + $0xa0] sm:$0xff]  ;;  %s1969_s7 = scalar_lea.vmem %s1220_s6, 4096  ;;  %p1974_p3 = scmp.lt.s32.totalorder %s1220_s6, %s1220_s6 }
  0x29   :  { %1264 = vmatprep.subr.bf16.mxu0 %v145_v3  ;;  %1824 = vmatprep.subr.bf16.mxu1 %v145_v3  ;;  %v146_v9 = vpack.c.bf16 %v2061_v7, %v2057_v5  ;;  %v2067_v10 = vld [vmem:[#allocation5 + $0x18] sm:$0xff]  ;;  %v2073_v13 = vld [vmem:[#allocation5 + $0xa8] sm:$0xff]  ;;  %v2077_v15 = vld [vmem:[#allocation5 + $0x20] sm:$0xff]  ;;  %p1970_p2 = scmp.ne.s32.totalorder %s1220_s6, %s1969_s7  ;;  %p1975_p4 = scmp.lt.s32.totalorder %s1969_s7, %s1969_s7 }
  0x2a   :  { %1265 = vmatpush3.bf16.msra.mxu0 %v137_v6  ;;  %1832 = vmatpush3.bf16.msra.mxu1 %v137_v6  ;;  %v138_v12 = vpack.c.bf16 %v2067_v10, %v2063_v8  ;;  %v147_v14 = vpack.c.bf16 %v2073_v13, %v2069_v11  ;;  %v2079_v16 = vld [vmem:[#allocation5 + $0x28] sm:$0xff]  ;;  %v2081_v17 = vld [vmem:[#allocation5 + $0xb0] sm:$0xff]  ;;  %v2083_v18 = vld [vmem:[#allocation5 + $0xb8] sm:$0xff] }
  0x2b   :  { %1266 = vmatprep.subr.bf16.mxu0 %v146_v9  ;;  %1825 = vmatprep.subr.bf16.mxu1 %v146_v9  ;;  %v139_v19 = vpack.c.bf16 %v2079_v16, %v2077_v15  ;;  %v148_v20 = vpack.c.bf16 %v2083_v18, %v2081_v17  ;;  %v2089_v21 = vld [vmem:[#allocation5 + $0x30] sm:$0xff]  ;;  %v2091_v22 = vld [vmem:[#allocation5 + $0x38] sm:$0xff]  ;;  %v2093_v23 = vld [vmem:[#allocation5 + $0xc0] sm:$0xff]  ;;  %p1976_p5 = por %p1975_p4, %p1974_p3 }
  0x2c   :  { %v2095_v24 = vld [vmem:[#allocation5 + $0xc8] sm:$0xff]  ;;  %v140_v25 = vpack.c.bf16 %v2091_v22, %v2089_v21  ;;  %v2101_v27 = vld [vmem:[#allocation5 + $0x40] sm:$0xff]  ;;  %v2105_v29 = vld [vmem:[#allocation5 + $0xd0] sm:$0xff] }
  0x2d   :  { %v149_v26 = vpack.c.bf16 %v2095_v24, %v2093_v23  ;;  %v2103_v28 = vld [vmem:[#allocation5 + $0x48] sm:$0xff]  ;;  %v2107_v30 = vld [vmem:[#allocation5 + $0xd8] sm:$0xff]  ;;  %v2109_v31 = vld [vmem:[#allocation5 + $0x50] sm:$0xff]  ;;  %p1977_p6 = pnand %p1976_p5, %p1970_p2 }
  0x2e   :  { %1267 = vmatpush3.bf16.msra.mxu0 %v138_v12  ;;  %1833 = vmatpush3.bf16.msra.mxu1 %v138_v12  ;;  %v141_v32 = vpack.c.bf16 %v2103_v28, %v2101_v27  ;;  %v2113_v33 = vld [vmem:[#allocation5 + $0x58] sm:$0xff]  ;;  %v150_v34 = vpack.c.bf16 %v2107_v30, %v2105_v29  ;;  %v2117_v35 = vld [vmem:[#allocation2 + $0x4] ss:$8 sps:$4 sm:$0xff]   ;;  %v2135_v43 = vld [vmem:[#allocation5 + $0xf0] sm:$0xff] }
  0x2f   :  { %1268 = vmatprep.subr.bf16.mxu0 %v147_v14  ;;  %1826 = vmatprep.subr.bf16.mxu1 %v147_v14  ;;  %3020 = vst [vmem:[#allocation11_spill] sm:$0xff] %v2117_v35  ;;  %v2119_v36 = vld [vmem:[#allocation2 + $0x84] ss:$8 sps:$4 sm:$0xff]   ;;  %v142_v39 = vpack.c.bf16 %v2113_v33, %v2109_v31  ;;  %v2137_v44 = vld [vmem:[#allocation5 + $0xf8] sm:$0xff]  ;;  %v2141_v46 = vld [vmem:[#allocation5 + $0x70] sm:$0xff] }
  0x30   :  { %3021 = vst [vmem:[#allocation12_spill] sm:$0xff] %v2119_v36  ;;  %v2121_v37 = vld [vmem:[#allocation5 + $0xe0] sm:$0xff]  ;;  %v2123_v38 = vld [vmem:[#allocation5 + $0xe8] sm:$0xff]  ;;  %345 = vmatprep.mubr.bf16.mxu0 %v2117_v35  ;;  %409 = vmatprep.mubr.bf16.mxu1 %v2119_v36  ;;  %v152_v47 = vpack.c.bf16 %v2137_v44, %v2135_v43  ;;  %v2145_v48 = vld [vmem:[#allocation5 + $0x78] sm:$0xff] }
  0x31   :  { %v2129_v40 = vld [vmem:[#allocation5 + $0x60] sm:$0xff]  ;;  %v2131_v41 = vld [vmem:[#allocation5 + $0x68] sm:$0xff]  ;;  %v151_v42 = vpack.c.bf16 %v2123_v38, %v2121_v37  ;;  %v144_v49 = vpack.c.bf16 %v2145_v48, %v2141_v46  ;;  %v2153_v52 = vld [vmem:[#allocation2 + $0x14] ss:$8 sps:$4 sm:$0xff]  }
  0x32   :  { %1269 = vmatpush3.bf16.msra.mxu0 %v139_v19  ;;  %1834 = vmatpush3.bf16.msra.mxu1 %v139_v19  ;;  %v143_v45 = vpack.c.bf16 %v2131_v41, %v2129_v40  ;;  %v2149_v50 = vld [vmem:[#allocation2] ss:$8 sps:$4 sm:$0xff]   ;;  %v2155_v53 = vld [vmem:[#allocation2 + $0x94] ss:$8 sps:$4 sm:$0xff]   ;;  %v2161_v54 = vld [vmem:[#allocation2 + $0x10] ss:$8 sps:$4 sm:$0xff]  }
  0x33   :  { %1270 = vmatprep.subr.bf16.mxu0 %v148_v20  ;;  %1827 = vmatprep.subr.bf16.mxu1 %v148_v20  ;;  %v2151_v51 = vld [vmem:[#allocation2 + $0x80] ss:$8 sps:$4 sm:$0xff]   ;;  %3023 = vst [vmem:[#allocation14_spill] sm:$0xff] %v2155_v53  ;;  %v2163_v55 = vld [vmem:[#allocation2 + $0x90] ss:$8 sps:$4 sm:$0xff]  }
  0x34   :  { %3022 = vst [vmem:[#allocation13_spill] sm:$0xff] %v2151_v51  ;;  %3024 = vst [vmem:[#allocation15_spill] sm:$0xff] %v2163_v55  ;;  %v2165_v56 = vld [vmem:[#allocation2 + $0x24] ss:$8 sps:$4 sm:$0xff]   ;;  %v2173_v58 = vld [vmem:[#allocation2 + $0x20] ss:$8 sps:$4 sm:$0xff]  }
  0x35   :  { %v2167_v57 = vld [vmem:[#allocation2 + $0xa4] ss:$8 sps:$4 sm:$0xff]   ;;  %v2175_v59 = vld [vmem:[#allocation2 + $0xa0] ss:$8 sps:$4 sm:$0xff]   ;;  %v2177_v60 = vld [vmem:[#allocation2 + $0x34] ss:$8 sps:$4 sm:$0xff]  }
  0x36   :  { %1271 = vmatpush3.bf16.msra.mxu0 %v140_v25  ;;  %1835 = vmatpush3.bf16.msra.mxu1 %v140_v25  ;;  %3025 = vst [vmem:[#allocation16_spill] sm:$0xff] %v2167_v57  ;;  %3026 = vst [vmem:[#allocation17_spill] sm:$0xff] %v2175_v59  ;;  %v2179_v61 = vld [vmem:[#allocation2 + $0xb4] ss:$8 sps:$4 sm:$0xff]   ;;  %v2185_v62 = vld [vmem:[#allocation2 + $0x30] ss:$8 sps:$4 sm:$0xff]  }
  0x37   :  { %1272 = vmatprep.subr.bf16.mxu0 %v149_v26  ;;  %1828 = vmatprep.subr.bf16.mxu1 %v149_v26  ;;  %3027 = vst [vmem:[#allocation18_spill] sm:$0xff] %v2179_v61  ;;  %v2187_v63 = vld [vmem:[#allocation2 + $0xb0] ss:$8 sps:$4 sm:$0xff]   ;;  %v2189_v3 = vld [vmem:[#allocation2 + $0x44] ss:$8 sps:$4 sm:$0xff]  }
  0x38   :  { %3028 = vst [vmem:[#allocation19_spill] sm:$0xff] %v2187_v63  ;;  %v2191_v6 = vld [vmem:[#allocation2 + $0xc4] ss:$8 sps:$4 sm:$0xff]   ;;  %v2197_v9 = vld [vmem:[#allocation2 + $0x40] ss:$8 sps:$4 sm:$0xff]  }
  0x39   :  { %3029 = vst [vmem:[#allocation20_spill] sm:$0xff] %v2191_v6  ;;  %v2199_v12 = vld [vmem:[#allocation2 + $0xc0] ss:$8 sps:$4 sm:$0xff]   ;;  %v2201_v14 = vld [vmem:[#allocation2 + $0x54] ss:$8 sps:$4 sm:$0xff]  }
  0x3a   :  { %1273 = vmatpush3.bf16.msra.mxu0 %v141_v32  ;;  %1836 = vmatpush3.bf16.msra.mxu1 %v141_v32  ;;  %3030 = vst [vmem:[#allocation21_spill] sm:$0xff] %v2199_v12  ;;  %v2203_v19 = vld [vmem:[#allocation2 + $0xd4] ss:$8 sps:$4 sm:$0xff]   ;;  %v2209_v20 = vld [vmem:[#allocation2 + $0x50] ss:$8 sps:$4 sm:$0xff]  }
  0x3b   :  { %1274 = vmatprep.subr.bf16.mxu0 %v150_v34  ;;  %1829 = vmatprep.subr.bf16.mxu1 %v150_v34  ;;  %3031 = vst [vmem:[#allocation22_spill] sm:$0xff] %v2203_v19  ;;  %v2211_v25 = vld [vmem:[#allocation2 + $0xd0] ss:$8 sps:$4 sm:$0xff]   ;;  %v2213_v26 = vld [vmem:[#allocation2 + $0x64] ss:$8 sps:$4 sm:$0xff]  }
  0x3c   :  { %3032 = vst [vmem:[#allocation23_spill] sm:$0xff] %v2211_v25  ;;  %v2215_v32 = vld [vmem:[#allocation2 + $0xe4] ss:$8 sps:$4 sm:$0xff]   ;;  %v2221_v34 = vld [vmem:[#allocation2 + $0x60] ss:$8 sps:$4 sm:$0xff]  }
  0x3d   :  { %3033 = vst [vmem:[#allocation24_spill] sm:$0xff] %v2215_v32  ;;  %3034 = vst [vmem:[#allocation25_spill] sm:$0xff] %v2221_v34 }
  0x3e   :  { %1275 = vmatpush3.bf16.msra.mxu0 %v142_v39  ;;  %1837 = vmatpush3.bf16.msra.mxu1 %v142_v39  ;;  %v2223_v39 = vld [vmem:[#allocation2 + $0xe0] ss:$8 sps:$4 sm:$0xff]  }
  0x3f   :  { %1276 = vmatprep.subr.bf16.mxu0 %v151_v42  ;;  %1830 = vmatprep.subr.bf16.mxu1 %v151_v42  ;;  %3035 = vst [vmem:[#allocation26_spill] sm:$0xff] %v2223_v39  ;;  %v2225_v42 = vld [vmem:[#allocation2 + $0x74] ss:$8 sps:$4 sm:$0xff]  }
  0x40   :  { %3036 = vst [vmem:[#allocation27_spill] sm:$0xff] %v2225_v42 }
  0x42   :  { %1277 = vmatpush3.bf16.msra.mxu0 %v143_v45  ;;  %1838 = vmatpush3.bf16.msra.mxu1 %v143_v45  ;;  %v2227_v45 = vld [vmem:[#allocation2 + $0xf4] ss:$8 sps:$4 sm:$0xff]  }
  0x43   :  { %1278 = vmatprep.subr.bf16.mxu0 %v152_v47  ;;  %1831 = vmatprep.subr.bf16.mxu1 %v152_v47  ;;  %3037 = vst [vmem:[#allocation28_spill] sm:$0xff] %v2227_v45  ;;  %v2233_v47 = vld [vmem:[#allocation2 + $0x70] ss:$8 sps:$4 sm:$0xff]  }
  0x44   :  { %3038 = vst [vmem:[#allocation29_spill] sm:$0xff] %v2233_v47 }
  0x46   :  { %1279 = vmatpush3.bf16.msra.mxu0 %v144_v49  ;;  %1839 = vmatpush3.bf16.msra.mxu1 %v144_v49  ;;  %v2235_v49 = vld [vmem:[#allocation2 + $0xf0] ss:$8 sps:$4 sm:$0xff]  }
  0x47   :  { %3039 = vst [vmem:[#allocation30_spill] sm:$0xff] %v2235_v49 }
  0x49   :  { %346 = vmatmul.mubr.bf16.vlgmr.msra.gmra.mrb[0].mxu0 %v2149_v50  ;;  %410 = vmatmul.mubr.bf16.vlgmr.msra.gmra.mrb[0].mxu1 %v2151_v51 }
  0x4a   :  { %353 = vmatprep.mubr.bf16.mxu0 %v2153_v52  ;;  %417 = vmatprep.mubr.bf16.mxu1 %v2155_v53 }
  0x51   :  { %354 = vmatmul.mubr.bf16.gmra.mrb[4].mxu0 %v2161_v54  ;;  %418 = vmatmul.mubr.bf16.gmra.mrb[4].mxu1 %v2163_v55 }
  0x52   :  { %361 = vmatprep.mubr.bf16.mxu0 %v2165_v56  ;;  %425 = vmatprep.mubr.bf16.mxu1 %v2167_v57 }
  0x59   :  { %362 = vmatmul.mubr.bf16.gmra.mrb[8].mxu0 %v2173_v58  ;;  %426 = vmatmul.mubr.bf16.gmra.mrb[8].mxu1 %v2175_v59 }
  0x5a   :  { %369 = vmatprep.mubr.bf16.mxu0 %v2177_v60  ;;  %433 = vmatprep.mubr.bf16.mxu1 %v2179_v61 }
  0x61   :  { %370 = vmatmul.mubr.bf16.gmra.mrb[12].mxu0 %v2185_v62  ;;  %434 = vmatmul.mubr.bf16.gmra.mrb[12].mxu1 %v2187_v63  ;;  %v2251_v63 = vmul.f32 0.15, %v2055_v4 }
  0x62   :  { %377 = vmatprep.mubr.bf16.mxu0 %v2189_v3  ;;  %441 = vmatprep.mubr.bf16.mxu1 %v2191_v6  ;;  %v2248_v6 = vmul.f32 0.15, %v2051_v2 }
  0x63   :  { %3042 = vst [vmem:[#allocation33_spill] sm:$0xff] %v2251_v63 }
  0x64   :  { %3041 = vst [vmem:[#allocation32_spill] sm:$0xff] %v2248_v6 }
  0x69   :  { %378 = vmatmul.mubr.bf16.gmra.mrb[16].mxu0 %v2197_v9  ;;  %442 = vmatmul.mubr.bf16.gmra.mrb[16].mxu1 %v2199_v12 }
  0x6a   :  { %385 = vmatprep.mubr.bf16.mxu0 %v2201_v14  ;;  %449 = vmatprep.mubr.bf16.mxu1 %v2203_v19  ;;  %v2245_v19 = vmul.f32 0.15, %v2049_v1 }
  0x6c   :  { %3040 = vst [vmem:[#allocation31_spill] sm:$0xff] %v2245_v19 }
  0x71   :  { %386 = vmatmul.mubr.bf16.gmra.mrb[20].mxu0 %v2209_v20  ;;  %450 = vmatmul.mubr.bf16.gmra.mrb[20].mxu1 %v2211_v25 }
  0x72   :  { %393 = vmatprep.mubr.bf16.mxu0 %v2213_v26  ;;  %457 = vmatprep.mubr.bf16.mxu1 %v2215_v32 }
  0x79   :  { %394 = vmatmul.mubr.bf16.gmra.mrb[24].mxu0 %v2221_v34  ;;  %458 = vmatmul.mubr.bf16.gmra.mrb[24].mxu1 %v2223_v39  ;;  %v2242_v39 = vmul.f32 0.15, %v2047_v0 }
  0x7a   :  { %401 = vmatprep.mubr.bf16.mxu0 %v2225_v42  ;;  %465 = vmatprep.mubr.bf16.mxu1 %v2227_v45 }
  0x81   :  { %402 = vmatmul.mubr.bf16.gmra.mrb[28].mxu0 %v2233_v47  ;;  %466 = vmatmul.mubr.bf16.gmra.mrb[28].mxu1 %v2235_v49 }
  0x82   :  { %522 = vmatprep.mubr.bf16.mxu1 %v2117_v35  ;;  %699 = vmatprep.mubr.bf16.mxu0 %v2117_v35 }
 0x11c   :  { %v1280_v32 = vpop.f32.mrb[0].mxu0  ;;  %v1328_v25 = vpop.f32.mrb[0].mxu1 }
 0x11d   :  { %v1281_v45 = vpop.f32.mrb[1].mxu0  ;;  %v1329_v12 = vpop.f32.mrb[1].mxu1 }
 0x11e   :  { %v1282_v49 = vadd.f32 %v1281_v45, %v1280_v32  ;;  %v1330_v61 = vadd.f32 %v1329_v12, %v1328_v25  ;;  %v1283_v59 = vpop.f32.mrb[2].mxu0  ;;  %v1331_v35 = vpop.f32.mrb[2].mxu1  ;;  %v2258_v12 = vmul.f32 0.15, %v2057_v5  ;;  %v2261_v25 = vmul.f32 0.15, %v2061_v7 }
 0x11f   :  { %v1284_v57 = vpop.f32.mrb[3].mxu0  ;;  %v1332_v55 = vpop.f32.mrb[3].mxu1 }
 0x120   :  { %v1285_v53 = vadd.f32 %v1284_v57, %v1283_v59  ;;  %v1333_v0 = vadd.f32 %v1332_v55, %v1331_v35  ;;  %v348_v51 = vadd.f32 %v1282_v49, %v2248_v6  ;;  %v412_v1 = vadd.f32 %v1330_v61, %v2242_v39 }
 0x121   :  { %v2264_v55 = vmul.f32 0.15, %v2063_v8  ;;  %v2267_v59 = vmul.f32 0.15, %v2067_v10 }
 0x122   :  { %v351_v36 = vadd.f32 %v1285_v53, %v2251_v63  ;;  %v415_v2 = vadd.f32 %v1333_v0, %v2245_v19 }
 0x123   :  { %3043 = vst [vmem:[#allocation34_spill] sm:$0xff] %v2264_v55  ;;  %3044 = vst [vmem:[#allocation35_spill] sm:$0xff] %v2267_v59 }
 0x124   :  { %v474_v47 = vpack.c.bf16 %v351_v36, %v348_v51  ;;  %v1286_v42 = vpop.f32.mrb[4].mxu0  ;;  %v1334_v4 = vpop.f32.mrb[4].mxu1  ;;  %v482_v34 = vpack.c.bf16 %v415_v2, %v412_v1 }
 0x125   :  { %v1287_v57 = vpop.f32.mrb[5].mxu0  ;;  %v1335_v35 = vpop.f32.mrb[5].mxu1 }
 0x126   :  { %v1288_v53 = vadd.f32 %v1287_v57, %v1286_v42  ;;  %v1336_v61 = vadd.f32 %v1335_v35, %v1334_v4  ;;  %v1289_v36 = vpop.f32.mrb[6].mxu0  ;;  %v1337_v51 = vpop.f32.mrb[6].mxu1  ;;  %1376 = vmatprep.subr.bf16.mxu1 %v482_v34  ;;  %v2274_v57 = vmul.f32 0.15, %v2069_v11  ;;  %v2277_v34 = vmul.f32 0.15, %v2073_v13 }
 0x127   :  { %v1290_v32 = vpop.f32.mrb[7].mxu0  ;;  %v1338_v45 = vpop.f32.mrb[7].mxu1  ;;  %1377 = vmatpush3.bf16.msra.mxu1 %v474_v47 }
 0x128   :  { %v1291_v5 = vadd.f32 %v1290_v32, %v1289_v36  ;;  %v1339_v49 = vadd.f32 %v1338_v45, %v1337_v51  ;;  %v356_v7 = vadd.f32 %v1288_v53, %v2264_v55  ;;  %v420_v0 = vadd.f32 %v1336_v61, %v2258_v12 }
 0x129   :  { %v2280_v53 = vmul.f32 0.15, %v2077_v15  ;;  %v2283_v61 = vmul.f32 0.15, %v2079_v16 }
 0x12a   :  { %v359_v8 = vadd.f32 %v1291_v5, %v2267_v59  ;;  %v423_v1 = vadd.f32 %v1339_v49, %v2261_v25 }
 0x12b   :  { %3045 = vst [vmem:[#allocation36_spill] sm:$0xff] %v2280_v53  ;;  %3046 = vst [vmem:[#allocation37_spill] sm:$0xff] %v2283_v61 }
 0x12c   :  { %v475_v10 = vpack.c.bf16 %v359_v8, %v356_v7  ;;  %v1292_v2 = vpop.f32.mrb[8].mxu0  ;;  %v1340_v42 = vpop.f32.mrb[8].mxu1  ;;  %v483_v4 = vpack.c.bf16 %v423_v1, %v420_v0 }
 0x12d   :  { %v1293_v47 = vpop.f32.mrb[9].mxu0  ;;  %v1341_v35 = vpop.f32.mrb[9].mxu1 }
 0x12e   :  { %v1294_v36 = vadd.f32 %v1293_v47, %v1292_v2  ;;  %v1342_v51 = vadd.f32 %v1341_v35, %v1340_v42  ;;  %v1295_v32 = vpop.f32.mrb[10].mxu0  ;;  %v1343_v45 = vpop.f32.mrb[10].mxu1  ;;  %1378 = vmatprep.subr.bf16.mxu1 %v483_v4  ;;  %v2290_v47 = vmul.f32 0.15, %v2081_v17  ;;  %v2293_v4 = vmul.f32 0.15, %v2083_v18 }
 0x12f   :  { %v1296_v5 = vpop.f32.mrb[11].mxu0  ;;  %v1344_v49 = vpop.f32.mrb[11].mxu1  ;;  %1379 = vmatpush3.bf16.msra.mxu1 %v475_v10 }
 0x130   :  { %v1297_v11 = vadd.f32 %v1296_v5, %v1295_v32  ;;  %v1345_v7 = vadd.f32 %v1344_v49, %v1343_v45  ;;  %v364_v13 = vadd.f32 %v1294_v36, %v2280_v53  ;;  %v428_v0 = vadd.f32 %v1342_v51, %v2274_v57 }
 0x131   :  { %v2296_v36 = vmul.f32 0.15, %v2089_v21  ;;  %v2299_v51 = vmul.f32 0.15, %v2091_v22 }
 0x132   :  { %v367_v15 = vadd.f32 %v1297_v11, %v2283_v61  ;;  %v431_v8 = vadd.f32 %v1345_v7, %v2277_v34 }
 0x133   :  { %3047 = vst [vmem:[#allocation38_spill] sm:$0xff] %v2296_v36  ;;  %3048 = vst [vmem:[#allocation39_spill] sm:$0xff] %v2299_v51 }
 0x134   :  { %v476_v16 = vpack.c.bf16 %v367_v15, %v364_v13  ;;  %v1298_v1 = vpop.f32.mrb[12].mxu0  ;;  %v1346_v2 = vpop.f32.mrb[12].mxu1  ;;  %v484_v42 = vpack.c.bf16 %v431_v8, %v428_v0 }
 0x135   :  { %v1299_v10 = vpop.f32.mrb[13].mxu0  ;;  %v1347_v35 = vpop.f32.mrb[13].mxu1 }
 0x136   :  { %v1300_v32 = vadd.f32 %v1299_v10, %v1298_v1  ;;  %v1348_v45 = vadd.f32 %v1347_v35, %v1346_v2  ;;  %v1301_v5 = vpop.f32.mrb[14].mxu0  ;;  %v1349_v49 = vpop.f32.mrb[14].mxu1  ;;  %1380 = vmatprep.subr.bf16.mxu1 %v484_v42  ;;  %v2306_v10 = vmul.f32 0.15, %v2093_v23  ;;  %v2309_v42 = vmul.f32 0.15, %v2095_v24 }
 0x137   :  { %v1302_v11 = vpop.f32.mrb[15].mxu0  ;;  %v1350_v7 = vpop.f32.mrb[15].mxu1  ;;  %1381 = vmatpush3.bf16.msra.mxu1 %v476_v16 }
 0x138   :  { %v1303_v17 = vadd.f32 %v1302_v11, %v1301_v5  ;;  %v1351_v13 = vadd.f32 %v1350_v7, %v1349_v49  ;;  %v372_v18 = vadd.f32 %v1300_v32, %v2296_v36  ;;  %v436_v0 = vadd.f32 %v1348_v45, %v2290_v47 }
 0x139   :  { %v2312_v32 = vmul.f32 0.15, %v2101_v27  ;;  %v2315_v45 = vmul.f32 0.15, %v2103_v28 }
 0x13a   :  { %v375_v21 = vadd.f32 %v1303_v17, %v2299_v51  ;;  %v439_v15 = vadd.f32 %v1351_v13, %v2293_v4 }
 0x13b   :  { %3049 = vst [vmem:[#allocation40_spill] sm:$0xff] %v2312_v32  ;;  %3050 = vst [vmem:[#allocation41_spill] sm:$0xff] %v2315_v45 }
 0x13c   :  { %v477_v22 = vpack.c.bf16 %v375_v21, %v372_v18  ;;  %v1304_v8 = vpop.f32.mrb[16].mxu0  ;;  %v1352_v1 = vpop.f32.mrb[16].mxu1  ;;  %v485_v2 = vpack.c.bf16 %v439_v15, %v436_v0 }
 0x13d   :  { %v1305_v16 = vpop.f32.mrb[17].mxu0  ;;  %v1353_v35 = vpop.f32.mrb[17].mxu1 }
 0x13e   :  { %v1306_v5 = vadd.f32 %v1305_v16, %v1304_v8  ;;  %v1354_v49 = vadd.f32 %v1353_v35, %v1352_v1  ;;  %v1307_v11 = vpop.f32.mrb[18].mxu0  ;;  %v1355_v7 = vpop.f32.mrb[18].mxu1  ;;  %1382 = vmatprep.subr.bf16.mxu1 %v485_v2  ;;  %v2322_v16 = vmul.f32 0.15, %v2105_v29  ;;  %v2325_v2 = vmul.f32 0.15, %v2107_v30 }
 0x13f   :  { %v1308_v17 = vpop.f32.mrb[19].mxu0  ;;  %v1356_v13 = vpop.f32.mrb[19].mxu1  ;;  %1383 = vmatpush3.bf16.msra.mxu1 %v477_v22 }
 0x140   :  { %v1309_v23 = vadd.f32 %v1308_v17, %v1307_v11  ;;  %v1357_v18 = vadd.f32 %v1356_v13, %v1355_v7  ;;  %v380_v24 = vadd.f32 %v1306_v5, %v2312_v32  ;;  %v444_v0 = vadd.f32 %v1354_v49, %v2306_v10 }
 0x141   :  { %v2328_v5 = vmul.f32 0.15, %v2109_v31  ;;  %v2331_v49 = vmul.f32 0.15, %v2113_v33 }
 0x142   :  { %v383_v27 = vadd.f32 %v1309_v23, %v2315_v45  ;;  %v447_v21 = vadd.f32 %v1357_v18, %v2309_v42 }
 0x143   :  { %3051 = vst [vmem:[#allocation42_spill] sm:$0xff] %v2328_v5  ;;  %3052 = vst [vmem:[#allocation43_spill] sm:$0xff] %v2331_v49 }
 0x144   :  { %v478_v28 = vpack.c.bf16 %v383_v27, %v380_v24  ;;  %v1310_v15 = vpop.f32.mrb[20].mxu0  ;;  %v1358_v8 = vpop.f32.mrb[20].mxu1  ;;  %v486_v1 = vpack.c.bf16 %v447_v21, %v444_v0 }
 0x145   :  { %v1311_v22 = vpop.f32.mrb[21].mxu0  ;;  %v1359_v35 = vpop.f32.mrb[21].mxu1 }
 0x146   :  { %v1312_v11 = vadd.f32 %v1311_v22, %v1310_v15  ;;  %v1360_v7 = vadd.f32 %v1359_v35, %v1358_v8  ;;  %v1313_v17 = vpop.f32.mrb[22].mxu0  ;;  %v1361_v13 = vpop.f32.mrb[22].mxu1  ;;  %1384 = vmatprep.subr.bf16.mxu1 %v486_v1  ;;  %v2338_v22 = vmul.f32 0.15, %v2121_v37  ;;  %v2341_v1 = vmul.f32 0.15, %v2123_v38 }
 0x147   :  { %v1314_v23 = vpop.f32.mrb[23].mxu0  ;;  %v1362_v18 = vpop.f32.mrb[23].mxu1  ;;  %1385 = vmatpush3.bf16.msra.mxu1 %v478_v28 }
 0x148   :  { %v1315_v29 = vadd.f32 %v1314_v23, %v1313_v17  ;;  %v1363_v24 = vadd.f32 %v1362_v18, %v1361_v13  ;;  %v388_v30 = vadd.f32 %v1312_v11, %v2328_v5  ;;  %v452_v0 = vadd.f32 %v1360_v7, %v2322_v16 }
 0x149   :  { %v2344_v11 = vmul.f32 0.15, %v2129_v40  ;;  %v2347_v7 = vmul.f32 0.15, %v2131_v41 }
 0x14a   :  { %v391_v31 = vadd.f32 %v1315_v29, %v2331_v49  ;;  %v455_v27 = vadd.f32 %v1363_v24, %v2325_v2 }
 0x14b   :  { %3053 = vst [vmem:[#allocation44_spill] sm:$0xff] %v2344_v11  ;;  %3054 = vst [vmem:[#allocation45_spill] sm:$0xff] %v2347_v7 }
 0x14c   :  { %v479_v33 = vpack.c.bf16 %v391_v31, %v388_v30  ;;  %v1316_v21 = vpop.f32.mrb[24].mxu0  ;;  %v1364_v15 = vpop.f32.mrb[24].mxu1  ;;  %v487_v8 = vpack.c.bf16 %v455_v27, %v452_v0 }
 0x14d   :  { %v1317_v28 = vpop.f32.mrb[25].mxu0  ;;  %v1365_v35 = vpop.f32.mrb[25].mxu1 }
 0x14e   :  { %v1318_v17 = vadd.f32 %v1317_v28, %v1316_v21  ;;  %v1366_v13 = vadd.f32 %v1365_v35, %v1364_v15  ;;  %v1319_v23 = vpop.f32.mrb[26].mxu0  ;;  %v1367_v18 = vpop.f32.mrb[26].mxu1  ;;  %1386 = vmatprep.subr.bf16.mxu1 %v487_v8  ;;  %v2354_v28 = vmul.f32 0.15, %v2135_v43  ;;  %v2357_v8 = vmul.f32 0.15, %v2137_v44 }
 0x14f   :  { %v1320_v29 = vpop.f32.mrb[27].mxu0  ;;  %v1368_v24 = vpop.f32.mrb[27].mxu1  ;;  %1387 = vmatpush3.bf16.msra.mxu1 %v479_v33 }
 0x150   :  { %v1321_v37 = vadd.f32 %v1320_v29, %v1319_v23  ;;  %v1369_v30 = vadd.f32 %v1368_v24, %v1367_v18  ;;  %v396_v38 = vadd.f32 %v1318_v17, %v2344_v11  ;;  %v460_v0 = vadd.f32 %v1366_v13, %v2338_v22 }
 0x151   :  { %v2360_v17 = vmul.f32 0.15, %v2141_v46  ;;  %v2363_v13 = vmul.f32 0.15, %v2145_v48 }
 0x152   :  { %v399_v40 = vadd.f32 %v1321_v37, %v2347_v7  ;;  %v463_v31 = vadd.f32 %v1369_v30, %v2341_v1 }
 0x153   :  { %3055 = vst [vmem:[#allocation46_spill] sm:$0xff] %v2360_v17  ;;  %3056 = vst [vmem:[#allocation47_spill] sm:$0xff] %v2363_v13 }
 0x154   :  { %v480_v41 = vpack.c.bf16 %v399_v40, %v396_v38  ;;  %v1322_v27 = vpop.f32.mrb[28].mxu0  ;;  %v1370_v21 = vpop.f32.mrb[28].mxu1  ;;  %v488_v15 = vpack.c.bf16 %v463_v31, %v460_v0 }
 0x155   :  { %v1323_v33 = vpop.f32.mrb[29].mxu0  ;;  %v1371_v35 = vpop.f32.mrb[29].mxu1 }
 0x156   :  { %v1324_v23 = vadd.f32 %v1323_v33, %v1322_v27  ;;  %v1372_v18 = vadd.f32 %v1371_v35, %v1370_v21  ;;  %v1325_v29 = vpop.f32.mrb[30].mxu0  ;;  %v1373_v24 = vpop.f32.mrb[30].mxu1  ;;  %1388 = vmatprep.subr.bf16.mxu1 %v488_v15  ;;  %v3058_v27 = vld [vmem:[#allocation27_spill] sm:$0xff]  ;;  %v3059_v21 = vld [vmem:[#allocation29_spill] sm:$0xff]  ;;  %v3060_v15 = vld [vmem:[#allocation12_spill] sm:$0xff] }
 0x157   :  { %v1326_v37 = vpop.f32.mrb[31].mxu0  ;;  %v1374_v30 = vpop.f32.mrb[31].mxu1  ;;  %1389 = vmatpush3.bf16.msra.mxu1 %v480_v41  ;;  %v3057_v41 = vld [vmem:[#allocation25_spill] sm:$0xff]  ;;  %v3062_v35 = vld [vmem:[#allocation14_spill] sm:$0xff] }
 0x158   :  { %v1327_v43 = vadd.f32 %v1326_v37, %v1325_v29  ;;  %v1375_v38 = vadd.f32 %v1374_v30, %v1373_v24  ;;  %v404_v44 = vadd.f32 %v1324_v23, %v2360_v17  ;;  %v468_v0 = vadd.f32 %v1372_v18, %v2354_v28  ;;  %v3061_v33 = vld [vmem:[#allocation13_spill] sm:$0xff]  ;;  %v3063_v23 = vld [vmem:[#allocation15_spill] sm:$0xff]  ;;  %v3064_v18 = vld [vmem:[#allocation16_spill] sm:$0xff] }
 0x159   :  { %v3065_v29 = vld [vmem:[#allocation17_spill] sm:$0xff]  ;;  %v3066_v24 = vld [vmem:[#allocation18_spill] sm:$0xff]  ;;  %v3067_v37 = vld [vmem:[#allocation19_spill] sm:$0xff] }
 0x15a   :  { %v407_v46 = vadd.f32 %v1327_v43, %v2363_v13  ;;  %v471_v40 = vadd.f32 %v1375_v38, %v2357_v8  ;;  %v3068_v30 = vld [vmem:[#allocation20_spill] sm:$0xff]  ;;  %v3069_v43 = vld [vmem:[#allocation21_spill] sm:$0xff]  ;;  %v3070_v38 = vld [vmem:[#allocation22_spill] sm:$0xff] }
 0x15c   :  { %v481_v48 = vpack.c.bf16 %v407_v46, %v404_v44  ;;  %v489_v31 = vpack.c.bf16 %v471_v40, %v468_v0  ;;  %v3071_v44 = vld [vmem:[#allocation23_spill] sm:$0xff]  ;;  %v3072_v0 = vld [vmem:[#allocation24_spill] sm:$0xff]  ;;  %v3073_v46 = vld [vmem:[#allocation26_spill] sm:$0xff] }
 0x15d   :  { %v3074_v40 = vld [vmem:[#allocation28_spill] sm:$0xff] }
 0x15e   :  { %1390 = vmatprep.subr.bf16.mxu1 %v489_v31  ;;  %v3076_v31 = vld [vmem:[#allocation11_spill] sm:$0xff] }
 0x15f   :  { %1391 = vmatpush3.bf16.msra.mxu1 %v481_v48  ;;  %v3075_v48 = vld [vmem:[#allocation30_spill] sm:$0xff] }
 0x162   :  { %523 = vmatmul.mubr.bf16.vlgmr.msra.gmra.mrb[32].mxu1 %v2149_v50 }
 0x163   :  { %530 = vmatprep.mubr.bf16.mxu1 %v2153_v52 }
 0x16a   :  { %531 = vmatmul.mubr.bf16.gmra.mrb[36].mxu1 %v2161_v54 }
 0x16b   :  { %538 = vmatprep.mubr.bf16.mxu1 %v2165_v56 }
 0x172   :  { %539 = vmatmul.mubr.bf16.gmra.mrb[40].mxu1 %v2173_v58 }
 0x173   :  { %546 = vmatprep.mubr.bf16.mxu1 %v2177_v60 }
 0x17a   :  { %547 = vmatmul.mubr.bf16.gmra.mrb[44].mxu1 %v2185_v62 }
 0x17b   :  { %554 = vmatprep.mubr.bf16.mxu1 %v2189_v3 }
 0x182   :  { %555 = vmatmul.mubr.bf16.gmra.mrb[48].mxu1 %v2197_v9 }
 0x183   :  { %562 = vmatprep.mubr.bf16.mxu1 %v2201_v14 }
 0x18a   :  { %563 = vmatmul.mubr.bf16.gmra.mrb[52].mxu1 %v2209_v20 }
 0x18b   :  { %570 = vmatprep.mubr.bf16.mxu1 %v2213_v26 }
 0x192   :  { %571 = vmatmul.mubr.bf16.gmra.mrb[56].mxu1 %v3057_v41 }
 0x193   :  { %578 = vmatprep.mubr.bf16.mxu1 %v3058_v27 }
 0x19a   :  { %579 = vmatmul.mubr.bf16.gmra.mrb[60].mxu1 %v3059_v21 }
 0x19b   :  { %586 = vmatprep.mubr.bf16.mxu1 %v3060_v15 }
 0x1a2   :  { %587 = vmatmul.mubr.bf16.gmra.mrb[64].mxu1 %v3061_v33 }
 0x1a3   :  { %594 = vmatprep.mubr.bf16.mxu1 %v3062_v35 }
 0x1aa   :  { %595 = vmatmul.mubr.bf16.gmra.mrb[68].mxu1 %v3063_v23 }
 0x1ab   :  { %602 = vmatprep.mubr.bf16.mxu1 %v3064_v18 }
 0x1b2   :  { %603 = vmatmul.mubr.bf16.gmra.mrb[72].mxu1 %v3065_v29 }
 0x1b3   :  { %610 = vmatprep.mubr.bf16.mxu1 %v3066_v24 }
 0x1ba   :  { %611 = vmatmul.mubr.bf16.gmra.mrb[76].mxu1 %v3067_v37 }
 0x1bb   :  { %618 = vmatprep.mubr.bf16.mxu1 %v3068_v30 }
 0x1c2   :  { %619 = vmatmul.mubr.bf16.gmra.mrb[80].mxu1 %v3069_v43 }
 0x1c3   :  { %626 = vmatprep.mubr.bf16.mxu1 %v3070_v38 }
 0x1ca   :  { %627 = vmatmul.mubr.bf16.gmra.mrb[84].mxu1 %v3071_v44 }
 0x1cb   :  { %634 = vmatprep.mubr.bf16.mxu1 %v3072_v0 }
 0x1d2   :  { %635 = vmatmul.mubr.bf16.gmra.mrb[88].mxu1 %v3073_v46 }
 0x1d3   :  { %642 = vmatprep.mubr.bf16.mxu1 %v3074_v40 }
 0x1da   :  { %643 = vmatmul.mubr.bf16.gmra.mrb[92].mxu1 %v3075_v48 }
 0x1db   :  { %876 = vmatprep.mubr.bf16.mxu1 %v3076_v31 }
 0x235   :  { %v1392_v15 = vpop.f32.mrb[32].mxu1 }
 0x236   :  { %v1393_v37 = vpop.f32.mrb[33].mxu1 }
 0x237   :  { %v1394_v24 = vadd.f32 %v1393_v37, %v1392_v15  ;;  %v1395_v30 = vpop.f32.mrb[34].mxu1 }
 0x238   :  { %v1396_v29 = vpop.f32.mrb[35].mxu1 }
 0x239   :  { %v1397_v43 = vadd.f32 %v1396_v29, %v1395_v30  ;;  %v2402_v38 = vadd.f32 %v1394_v24, %v2248_v6 }
 0x23b   :  { %v2405_v44 = vadd.f32 %v1397_v43, %v2251_v63 }
 0x23d   :  { %v1398_v40 = vpop.f32.mrb[36].mxu1 }
 0x23e   :  { %v1399_v0 = vpop.f32.mrb[37].mxu1 }
 0x23f   :  { %v1400_v48 = vadd.f32 %v1399_v0, %v1398_v40  ;;  %v1401_v18 = vpop.f32.mrb[38].mxu1 }
 0x240   :  { %v1402_v31 = vpop.f32.mrb[39].mxu1 }
 0x241   :  { %v1403_v23 = vadd.f32 %v1402_v31, %v1401_v18  ;;  %v2410_v37 = vadd.f32 %v1400_v48, %v2264_v55 }
 0x243   :  { %v2413_v29 = vadd.f32 %v1403_v23, %v2267_v59 }
 0x245   :  { %v1404_v30 = vpop.f32.mrb[40].mxu1 }
 0x246   :  { %v1405_v43 = vpop.f32.mrb[41].mxu1 }
 0x247   :  { %v1406_v15 = vadd.f32 %v1405_v43, %v1404_v30  ;;  %v1407_v63 = vpop.f32.mrb[42].mxu1 }
 0x248   :  { %v1408_v46 = vpop.f32.mrb[43].mxu1 }
 0x249   :  { %v1409_v6 = vadd.f32 %v1408_v46, %v1407_v63  ;;  %v2418_v0 = vadd.f32 %v1406_v15, %v2280_v53 }
 0x24b   :  { %v2421_v18 = vadd.f32 %v1409_v6, %v2283_v61 }
 0x24d   :  { %v1410_v23 = vpop.f32.mrb[44].mxu1 }
 0x24e   :  { %v1411_v48 = vpop.f32.mrb[45].mxu1 }
 0x24f   :  { %v1412_v31 = vadd.f32 %v1411_v48, %v1410_v23  ;;  %v1413_v59 = vpop.f32.mrb[46].mxu1 }
 0x250   :  { %v1414_v24 = vpop.f32.mrb[47].mxu1 }
 0x251   :  { %v1415_v55 = vadd.f32 %v1414_v24, %v1413_v59  ;;  %v2426_v30 = vadd.f32 %v1412_v31, %v2296_v36 }
 0x253   :  { %v2429_v63 = vadd.f32 %v1415_v55, %v2299_v51 }
 0x255   :  { %v1416_v6 = vpop.f32.mrb[48].mxu1 }
 0x256   :  { %v1417_v43 = vpop.f32.mrb[49].mxu1 }
 0x257   :  { %v1418_v15 = vadd.f32 %v1417_v43, %v1416_v6  ;;  %v1419_v61 = vpop.f32.mrb[50].mxu1 }
 0x258   :  { %v1420_v40 = vpop.f32.mrb[51].mxu1 }
 0x259   :  { %v1421_v53 = vadd.f32 %v1420_v40, %v1419_v61  ;;  %v2434_v23 = vadd.f32 %v1418_v15, %v2312_v32 }
 0x25b   :  { %v2437_v59 = vadd.f32 %v1421_v53, %v2315_v45 }
 0x25d   :  { %v1422_v55 = vpop.f32.mrb[52].mxu1 }
 0x25e   :  { %v1423_v48 = vpop.f32.mrb[53].mxu1 }
 0x25f   :  { %v1424_v31 = vadd.f32 %v1423_v48, %v1422_v55  ;;  %v1425_v51 = vpop.f32.mrb[54].mxu1 }
 0x260   :  { %v1426_v46 = vpop.f32.mrb[55].mxu1 }
 0x261   :  { %v1427_v36 = vadd.f32 %v1426_v46, %v1425_v51  ;;  %v2442_v6 = vadd.f32 %v1424_v31, %v2328_v5 }
 0x263   :  { %v2445_v61 = vadd.f32 %v1427_v36, %v2331_v49 }
 0x265   :  { %v1428_v53 = vpop.f32.mrb[56].mxu1 }
 0x266   :  { %v1429_v43 = vpop.f32.mrb[57].mxu1 }
 0x267   :  { %v1430_v15 = vadd.f32 %v1429_v43, %v1428_v53  ;;  %v1431_v45 = vpop.f32.mrb[58].mxu1 }
 0x268   :  { %v1432_v24 = vpop.f32.mrb[59].mxu1 }
 0x269   :  { %v1433_v32 = vadd.f32 %v1432_v24, %v1431_v45  ;;  %v2450_v55 = vadd.f32 %v1430_v15, %v2344_v11  ;;  %v3077_v24 = vpack.c.bf16 %v2405_v44, %v2402_v38 }
 0x26b   :  { %v2453_v51 = vadd.f32 %v1433_v32, %v2347_v7 }
 0x26d   :  { %v1434_v36 = vpop.f32.mrb[60].mxu1 }
 0x26e   :  { %v1435_v48 = vpop.f32.mrb[61].mxu1 }
 0x26f   :  { %v1436_v31 = vadd.f32 %v1435_v48, %v1434_v36  ;;  %v1437_v49 = vpop.f32.mrb[62].mxu1 }
 0x270   :  { %v1438_v40 = vpop.f32.mrb[63].mxu1 }
 0x271   :  { %v1439_v5 = vadd.f32 %v1438_v40, %v1437_v49  ;;  %v2458_v53 = vadd.f32 %v1436_v31, %v2360_v17 }
 0x273   :  { %v2461_v45 = vadd.f32 %v1439_v5, %v2363_v13 }
 0x275   :  { %v1440_v32 = vpop.f32.mrb[64].mxu1 }
 0x276   :  { %v1441_v43 = vpop.f32.mrb[65].mxu1 }
 0x277   :  { %v1442_v15 = vadd.f32 %v1441_v43, %v1440_v32  ;;  %v1443_v7 = vpop.f32.mrb[66].mxu1 }
 0x278   :  { %v1444_v46 = vpop.f32.mrb[67].mxu1 }
 0x279   :  { %v1445_v11 = vadd.f32 %v1444_v46, %v1443_v7  ;;  %v589_v36 = vadd.f32 %v1442_v15, %v2242_v39 }
 0x27b   :  { %v592_v48 = vadd.f32 %v1445_v11, %v2245_v19 }
 0x27d   :  { %v1446_v49 = vpop.f32.mrb[68].mxu1  ;;  %v659_v40 = vpack.c.bf16 %v592_v48, %v589_v36  ;;  %v3078_v48 = vpack.c.bf16 %v2413_v29, %v2410_v37 }
 0x27e   :  { %v1447_v31 = vpop.f32.mrb[69].mxu1 }
 0x27f   :  { %v1448_v17 = vadd.f32 %v1447_v31, %v1446_v49  ;;  %v1449_v35 = vpop.f32.mrb[70].mxu1  ;;  %1488 = vmatprep.subr.bf16.mxu0 %v659_v40 }
 0x280   :  { %v1450_v5 = vpop.f32.mrb[71].mxu1  ;;  %1489 = vmatpush3.bf16.msra.mxu0 %v3077_v24 }
 0x281   :  { %v1451_v13 = vadd.f32 %v1450_v5, %v1449_v35  ;;  %v597_v32 = vadd.f32 %v1448_v17, %v2258_v12  ;;  %v3079_v5 = vpack.c.bf16 %v2421_v18, %v2418_v0 }
 0x283   :  { %v600_v7 = vadd.f32 %v1451_v13, %v2261_v25 }
 0x285   :  { %v1452_v46 = vpop.f32.mrb[72].mxu1  ;;  %v660_v43 = vpack.c.bf16 %v600_v7, %v597_v32 }
 0x286   :  { %v1453_v15 = vpop.f32.mrb[73].mxu1 }
 0x287   :  { %v1454_v11 = vadd.f32 %v1453_v15, %v1452_v46  ;;  %v1455_v19 = vpop.f32.mrb[74].mxu1  ;;  %1490 = vmatprep.subr.bf16.mxu0 %v660_v43 }
 0x288   :  { %v1456_v36 = vpop.f32.mrb[75].mxu1  ;;  %1491 = vmatpush3.bf16.msra.mxu0 %v3078_v48 }
 0x289   :  { %v1457_v49 = vadd.f32 %v1456_v36, %v1455_v19  ;;  %v605_v38 = vadd.f32 %v1454_v11, %v2274_v57  ;;  %v3080_v36 = vpack.c.bf16 %v2429_v63, %v2426_v30 }
 0x28b   :  { %v608_v35 = vadd.f32 %v1457_v49, %v2277_v34 }
 0x28d   :  { %v1458_v44 = vpop.f32.mrb[76].mxu1  ;;  %v661_v17 = vpack.c.bf16 %v608_v35, %v605_v38 }
 0x28e   :  { %v1459_v24 = vpop.f32.mrb[77].mxu1 }
 0x28f   :  { %v1460_v13 = vadd.f32 %v1459_v24, %v1458_v44  ;;  %v1461_v40 = vpop.f32.mrb[78].mxu1  ;;  %1492 = vmatprep.subr.bf16.mxu0 %v661_v17 }
 0x290   :  { %v1462_v31 = vpop.f32.mrb[79].mxu1  ;;  %1493 = vmatpush3.bf16.msra.mxu0 %v3079_v5 }
 0x291   :  { %v1463_v32 = vadd.f32 %v1462_v31, %v1461_v40  ;;  %v613_v37 = vadd.f32 %v1460_v13, %v2290_v47  ;;  %v3081_v13 = vpack.c.bf16 %v2437_v59, %v2434_v23 }
 0x293   :  { %v616_v19 = vadd.f32 %v1463_v32, %v2293_v4 }
 0x295   :  { %v1464_v29 = vpop.f32.mrb[80].mxu1  ;;  %v662_v7 = vpack.c.bf16 %v616_v19, %v613_v37 }
 0x296   :  { %v1465_v46 = vpop.f32.mrb[81].mxu1 }
 0x297   :  { %v1466_v43 = vadd.f32 %v1465_v46, %v1464_v29  ;;  %v1467_v15 = vpop.f32.mrb[82].mxu1  ;;  %1494 = vmatprep.subr.bf16.mxu0 %v662_v7  ;;  %v3082_v7 = vpack.c.bf16 %v2445_v61, %v2442_v6 }
 0x298   :  { %v1468_v11 = vpop.f32.mrb[83].mxu1  ;;  %1495 = vmatpush3.bf16.msra.mxu0 %v3080_v36 }
 0x299   :  { %v1469_v48 = vadd.f32 %v1468_v11, %v1467_v15  ;;  %v621_v0 = vadd.f32 %v1466_v43, %v2306_v10 }
 0x29b   :  { %v624_v18 = vadd.f32 %v1469_v48, %v2309_v42 }
 0x29d   :  { %v1470_v49 = vpop.f32.mrb[84].mxu1  ;;  %v663_v38 = vpack.c.bf16 %v624_v18, %v621_v0  ;;  %v3083_v18 = vpack.c.bf16 %v2453_v51, %v2450_v55 }
 0x29e   :  { %v1471_v35 = vpop.f32.mrb[85].mxu1 }
 0x29f   :  { %v1472_v44 = vadd.f32 %v1471_v35, %v1470_v49  ;;  %v1473_v17 = vpop.f32.mrb[86].mxu1  ;;  %1496 = vmatprep.subr.bf16.mxu0 %v663_v38  ;;  %v3084_v35 = vpack.c.bf16 %v2461_v45, %v2458_v53 }
 0x2a0   :  { %v1474_v24 = vpop.f32.mrb[87].mxu1  ;;  %1497 = vmatpush3.bf16.msra.mxu0 %v3081_v13 }
 0x2a1   :  { %v1475_v40 = vadd.f32 %v1474_v24, %v1473_v17  ;;  %v629_v30 = vadd.f32 %v1472_v44, %v2322_v16  ;;  %v3099_v24 = vld [vmem:[#allocation32_spill] sm:$0xff] }
 0x2a3   :  { %v632_v63 = vadd.f32 %v1475_v40, %v2325_v2  ;;  %v3100_v40 = vld [vmem:[#allocation33_spill] sm:$0xff] }
 0x2a5   :  { %v1476_v31 = vpop.f32.mrb[88].mxu1  ;;  %v664_v5 = vpack.c.bf16 %v632_v63, %v629_v30 }
 0x2a6   :  { %v1477_v32 = vpop.f32.mrb[89].mxu1 }
 0x2a7   :  { %v1478_v37 = vadd.f32 %v1477_v32, %v1476_v31  ;;  %v1479_v19 = vpop.f32.mrb[90].mxu1  ;;  %1498 = vmatprep.subr.bf16.mxu0 %v664_v5 }
 0x2a8   :  { %v1480_v29 = vpop.f32.mrb[91].mxu1  ;;  %1499 = vmatpush3.bf16.msra.mxu0 %v3082_v7  ;;  %v3101_v7 = vld [vmem:[#allocation34_spill] sm:$0xff] }
 0x2a9   :  { %v1481_v46 = vadd.f32 %v1480_v29, %v1479_v19  ;;  %v637_v23 = vadd.f32 %v1478_v37, %v2338_v22 }
 0x2ab   :  { %v640_v59 = vadd.f32 %v1481_v46, %v2341_v1 }
 0x2ad   :  { %v1482_v43 = vpop.f32.mrb[92].mxu1  ;;  %v665_v15 = vpack.c.bf16 %v640_v59, %v637_v23  ;;  %v3102_v23 = vld [vmem:[#allocation35_spill] sm:$0xff] }
 0x2ae   :  { %v1483_v11 = vpop.f32.mrb[93].mxu1 }
 0x2af   :  { %v1484_v36 = vadd.f32 %v1483_v11, %v1482_v43  ;;  %v1485_v48 = vpop.f32.mrb[94].mxu1  ;;  %1500 = vmatprep.subr.bf16.mxu0 %v665_v15 }
 0x2b0   :  { %v1486_v0 = vpop.f32.mrb[95].mxu1  ;;  %1501 = vmatpush3.bf16.msra.mxu0 %v3083_v18 }
 0x2b1   :  { %v1487_v49 = vadd.f32 %v1486_v0, %v1485_v48  ;;  %v645_v6 = vadd.f32 %v1484_v36, %v2354_v28 }
 0x2b3   :  { %v648_v61 = vadd.f32 %v1487_v49, %v2357_v8  ;;  %v3103_v49 = vld [vmem:[#allocation36_spill] sm:$0xff] }
 0x2b5   :  { %v666_v38 = vpack.c.bf16 %v648_v61, %v645_v6  ;;  %v3104_v61 = vld [vmem:[#allocation37_spill] sm:$0xff] }
 0x2b7   :  { %1502 = vmatprep.subr.bf16.mxu0 %v666_v38 }
 0x2b8   :  { %1503 = vmatpush3.bf16.msra.mxu0 %v3084_v35 }
 0x2bb   :  { %700 = vmatmul.mubr.bf16.vlgmr.msra.gmra.mrb[32].mxu0 %v2149_v50  ;;  %v2520_v50 = vld [vmem:[#allocation2 + $0x84] ss:$8 sps:$4 sm:$0xff]  }
 0x2bc   :  { %707 = vmatprep.mubr.bf16.mxu0 %v2153_v52  ;;  %v3085_v52 = vld [vmem:[#allocation14_spill] sm:$0xff] }
 0x2c3   :  { %708 = vmatmul.mubr.bf16.gmra.mrb[36].mxu0 %v2161_v54  ;;  %v3086_v54 = vld [vmem:[#allocation15_spill] sm:$0xff] }
 0x2c4   :  { %715 = vmatprep.mubr.bf16.mxu0 %v2165_v56  ;;  %v3087_v56 = vld [vmem:[#allocation16_spill] sm:$0xff] }
 0x2cb   :  { %716 = vmatmul.mubr.bf16.gmra.mrb[40].mxu0 %v2173_v58  ;;  %v3088_v58 = vld [vmem:[#allocation17_spill] sm:$0xff] }
 0x2cc   :  { %723 = vmatprep.mubr.bf16.mxu0 %v2177_v60  ;;  %v3089_v60 = vld [vmem:[#allocation18_spill] sm:$0xff] }
 0x2d3   :  { %724 = vmatmul.mubr.bf16.gmra.mrb[44].mxu0 %v2185_v62  ;;  %v3090_v62 = vld [vmem:[#allocation19_spill] sm:$0xff] }
 0x2d4   :  { %731 = vmatprep.mubr.bf16.mxu0 %v2189_v3  ;;  %v3091_v3 = vld [vmem:[#allocation20_spill] sm:$0xff] }
 0x2db   :  { %732 = vmatmul.mubr.bf16.gmra.mrb[48].mxu0 %v2197_v9  ;;  %v3092_v9 = vld [vmem:[#allocation21_spill] sm:$0xff] }
 0x2dc   :  { %739 = vmatprep.mubr.bf16.mxu0 %v2201_v14  ;;  %v3093_v14 = vld [vmem:[#allocation22_spill] sm:$0xff] }
 0x2e3   :  { %740 = vmatmul.mubr.bf16.gmra.mrb[52].mxu0 %v2209_v20  ;;  %v3094_v20 = vld [vmem:[#allocation23_spill] sm:$0xff] }
 0x2e4   :  { %747 = vmatprep.mubr.bf16.mxu0 %v2213_v26  ;;  %v3095_v26 = vld [vmem:[#allocation24_spill] sm:$0xff] }
 0x2eb   :  { %748 = vmatmul.mubr.bf16.gmra.mrb[56].mxu0 %v3057_v41  ;;  %v3096_v41 = vld [vmem:[#allocation26_spill] sm:$0xff] }
 0x2ec   :  { %755 = vmatprep.mubr.bf16.mxu0 %v3058_v27  ;;  %v3097_v27 = vld [vmem:[#allocation28_spill] sm:$0xff] }
 0x2f3   :  { %756 = vmatmul.mubr.bf16.gmra.mrb[60].mxu0 %v3059_v21  ;;  %v3098_v21 = vld [vmem:[#allocation30_spill] sm:$0xff] }
 0x2f4   :  { %763 = vmatprep.mubr.bf16.mxu0 %v2520_v50 }
 0x2fb   :  { %764 = vmatmul.mubr.bf16.gmra.mrb[64].mxu0 %v3061_v33  ;;  %v1894_v33 = vld [vmem:[#allocation2 + $0x4] ss:$8 sps:$4 sm:$0xff]  }
 0x2fc   :  { %771 = vmatprep.mubr.bf16.mxu0 %v3085_v52 }
 0x303   :  { %772 = vmatmul.mubr.bf16.gmra.mrb[68].mxu0 %v3086_v54 }
 0x304   :  { %779 = vmatprep.mubr.bf16.mxu0 %v3087_v56 }
 0x30b   :  { %780 = vmatmul.mubr.bf16.gmra.mrb[72].mxu0 %v3088_v58 }
 0x30c   :  { %787 = vmatprep.mubr.bf16.mxu0 %v3089_v60 }
 0x313   :  { %788 = vmatmul.mubr.bf16.gmra.mrb[76].mxu0 %v3090_v62 }
 0x314   :  { %795 = vmatprep.mubr.bf16.mxu0 %v3091_v3  ;;  %v3105_v3 = vld [vmem:[#allocation38_spill] sm:$0xff] }
 0x31b   :  { %796 = vmatmul.mubr.bf16.gmra.mrb[80].mxu0 %v3092_v9 }
 0x31c   :  { %803 = vmatprep.mubr.bf16.mxu0 %v3093_v14  ;;  %v3106_v14 = vld [vmem:[#allocation39_spill] sm:$0xff] }
 0x323   :  { %804 = vmatmul.mubr.bf16.gmra.mrb[84].mxu0 %v3094_v20 }
 0x324   :  { %811 = vmatprep.mubr.bf16.mxu0 %v3095_v26 }
 0x32b   :  { %812 = vmatmul.mubr.bf16.gmra.mrb[88].mxu0 %v3096_v41 }
 0x32c   :  { %819 = vmatprep.mubr.bf16.mxu0 %v3097_v27 }
 0x333   :  { %820 = vmatmul.mubr.bf16.gmra.mrb[92].mxu0 %v3098_v21 }
 0x334   :  { %1053 = vmatprep.mubr.bf16.mxu0 %v1894_v33 }
 0x38e   :  { %v1504_v55 = vpop.f32.mrb[32].mxu0 }
 0x38f   :  { %v1505_v51 = vpop.f32.mrb[33].mxu0 }
 0x390   :  { %v1506_v53 = vadd.f32 %v1505_v51, %v1504_v55  ;;  %v1507_v45 = vpop.f32.mrb[34].mxu0 }
 0x391   :  { %v1508_v44 = vpop.f32.mrb[35].mxu0 }
 0x392   :  { %v1509_v17 = vadd.f32 %v1508_v44, %v1507_v45  ;;  %v2539_v13 = vadd.f32 %v1506_v53, %v3099_v24  ;;  %v3107_v53 = vld [vmem:[#allocation40_spill] sm:$0xff]  ;;  %v3108_v44 = vld [vmem:[#allocation41_spill] sm:$0xff] }
 0x394   :  { %v2542_v30 = vadd.f32 %v1509_v17, %v3100_v40 }
 0x396   :  { %v1510_v31 = vpop.f32.mrb[36].mxu0 }
 0x397   :  { %v1511_v5 = vpop.f32.mrb[37].mxu0 }
 0x398   :  { %v1512_v32 = vadd.f32 %v1511_v5, %v1510_v31  ;;  %v1513_v37 = vpop.f32.mrb[38].mxu0 }
 0x399   :  { %v1514_v19 = vpop.f32.mrb[39].mxu0 }
 0x39a   :  { %v1515_v29 = vadd.f32 %v1514_v19, %v1513_v37  ;;  %v2547_v46 = vadd.f32 %v1512_v32, %v3101_v7 }
 0x39c   :  { %v2550_v59 = vadd.f32 %v1515_v29, %v3102_v23 }
 0x39e   :  { %v1516_v15 = vpop.f32.mrb[40].mxu0 }
 0x39f   :  { %v1517_v11 = vpop.f32.mrb[41].mxu0 }
 0x3a0   :  { %v1518_v36 = vadd.f32 %v1517_v11, %v1516_v15  ;;  %v1519_v48 = vpop.f32.mrb[42].mxu0  ;;  %v3109_v11 = vld [vmem:[#allocation42_spill] sm:$0xff] }
 0x3a1   :  { %v1520_v0 = vpop.f32.mrb[43].mxu0 }
 0x3a2   :  { %v1521_v18 = vadd.f32 %v1520_v0, %v1519_v48  ;;  %v2555_v6 = vadd.f32 %v1518_v36, %v3103_v49  ;;  %v3110_v48 = vld [vmem:[#allocation43_spill] sm:$0xff] }
 0x3a4   :  { %v2558_v38 = vadd.f32 %v1521_v18, %v3104_v61 }
 0x3a6   :  { %v1522_v52 = vpop.f32.mrb[44].mxu0 }
 0x3a7   :  { %v1523_v54 = vpop.f32.mrb[45].mxu0 }
 0x3a8   :  { %v1524_v56 = vadd.f32 %v1523_v54, %v1522_v52  ;;  %v1525_v58 = vpop.f32.mrb[46].mxu0 }
 0x3a9   :  { %v1526_v60 = vpop.f32.mrb[47].mxu0 }
 0x3aa   :  { %v1527_v62 = vadd.f32 %v1526_v60, %v1525_v58  ;;  %v2563_v9 = vadd.f32 %v1524_v56, %v3105_v3 }
 0x3ac   :  { %v2566_v20 = vadd.f32 %v1527_v62, %v3106_v14 }
 0x3ae   :  { %v1528_v41 = vpop.f32.mrb[48].mxu0 }
 0x3af   :  { %v1529_v27 = vpop.f32.mrb[49].mxu0 }
 0x3b0   :  { %v1530_v21 = vadd.f32 %v1529_v27, %v1528_v41  ;;  %v1531_v33 = vpop.f32.mrb[50].mxu0  ;;  %v3111_v41 = vld [vmem:[#allocation44_spill] sm:$0xff] }
 0x3b1   :  { %v1532_v55 = vpop.f32.mrb[51].mxu0 }
 0x3b2   :  { %v1533_v51 = vadd.f32 %v1532_v55, %v1531_v33  ;;  %v2571_v45 = vadd.f32 %v1530_v21, %v3107_v53  ;;  %v3112_v21 = vld [vmem:[#allocation45_spill] sm:$0xff] }
 0x3b4   :  { %v2574_v17 = vadd.f32 %v1533_v51, %v3108_v44 }
 0x3b6   :  { %v1534_v5 = vpop.f32.mrb[52].mxu0 }
 0x3b7   :  { %v1535_v32 = vpop.f32.mrb[53].mxu0 }
 0x3b8   :  { %v1536_v37 = vadd.f32 %v1535_v32, %v1534_v5  ;;  %v1537_v19 = vpop.f32.mrb[54].mxu0 }
 0x3b9   :  { %v1538_v29 = vpop.f32.mrb[55].mxu0 }
 0x3ba   :  { %v1539_v15 = vadd.f32 %v1538_v29, %v1537_v19  ;;  %v2579_v36 = vadd.f32 %v1536_v37, %v3109_v11 }
 0x3bc   :  { %v2582_v0 = vadd.f32 %v1539_v15, %v3110_v48  ;;  %v3113_v15 = vld [vmem:[#allocation46_spill] sm:$0xff] }
 0x3be   :  { %v1540_v52 = vpop.f32.mrb[56].mxu0 }
 0x3bf   :  { %v1541_v54 = vpop.f32.mrb[57].mxu0 }
 0x3c0   :  { %v1542_v56 = vadd.f32 %v1541_v54, %v1540_v52  ;;  %v1543_v58 = vpop.f32.mrb[58].mxu0  ;;  %v3114_v54 = vld [vmem:[#allocation47_spill] sm:$0xff] }
 0x3c1   :  { %v1544_v60 = vpop.f32.mrb[59].mxu0 }
 0x3c2   :  { %v1545_v62 = vadd.f32 %v1544_v60, %v1543_v58  ;;  %v2587_v27 = vadd.f32 %v1542_v56, %v3111_v41  ;;  %v3116_v56 = vpack.c.bf16 %v2542_v30, %v2539_v13 }
 0x3c4   :  { %v2590_v33 = vadd.f32 %v1545_v62, %v3112_v21 }
 0x3c6   :  { %v1546_v51 = vpop.f32.mrb[60].mxu0 }
 0x3c7   :  { %v1547_v5 = vpop.f32.mrb[61].mxu0 }
 0x3c8   :  { %v1548_v32 = vadd.f32 %v1547_v5, %v1546_v51  ;;  %v1549_v37 = vpop.f32.mrb[62].mxu0  ;;  %v3115_v5 = vld [vmem:[#allocation31_spill] sm:$0xff] }
 0x3c9   :  { %v1550_v19 = vpop.f32.mrb[63].mxu0 }
 0x3ca   :  { %v1551_v29 = vadd.f32 %v1550_v19, %v1549_v37  ;;  %v2595_v52 = vadd.f32 %v1548_v32, %v3113_v15 }
 0x3cc   :  { %v2598_v58 = vadd.f32 %v1551_v29, %v3114_v54 }
 0x3ce   :  { %v1552_v60 = vpop.f32.mrb[64].mxu0 }
 0x3cf   :  { %v1553_v62 = vpop.f32.mrb[65].mxu0 }
 0x3d0   :  { %v1554_v18 = vadd.f32 %v1553_v62, %v1552_v60  ;;  %v1555_v31 = vpop.f32.mrb[66].mxu0 }
 0x3d1   :  { %v1556_v55 = vpop.f32.mrb[67].mxu0 }
 0x3d2   :  { %v1557_v26 = vadd.f32 %v1556_v55, %v1555_v31  ;;  %v766_v51 = vadd.f32 %v1554_v18, %v2242_v39 }
 0x3d4   :  { %v769_v35 = vadd.f32 %v1557_v26, %v3115_v5 }
 0x3d6   :  { %v1558_v37 = vpop.f32.mrb[68].mxu0  ;;  %v836_v19 = vpack.c.bf16 %v769_v35, %v766_v51  ;;  %v3117_v51 = vpack.c.bf16 %v2550_v59, %v2547_v46 }
 0x3d7   :  { %v1559_v32 = vpop.f32.mrb[69].mxu0 }
 0x3d8   :  { %v1560_v43 = vadd.f32 %v1559_v32, %v1558_v37  ;;  %v1561_v63 = vpop.f32.mrb[70].mxu0  ;;  %1600 = vmatprep.subr.bf16.mxu1 %v836_v19 }
 0x3d9   :  { %v1562_v29 = vpop.f32.mrb[71].mxu0  ;;  %1601 = vmatpush3.bf16.msra.mxu1 %v3116_v56 }
 0x3da   :  { %v1563_v54 = vadd.f32 %v1562_v29, %v1561_v63  ;;  %v774_v60 = vadd.f32 %v1560_v43, %v2258_v12  ;;  %v3118_v29 = vpack.c.bf16 %v2558_v38, %v2555_v6 }
 0x3dc   :  { %v777_v31 = vadd.f32 %v1563_v54, %v2261_v25 }
 0x3de   :  { %v1564_v55 = vpop.f32.mrb[72].mxu0  ;;  %v837_v18 = vpack.c.bf16 %v777_v31, %v774_v60 }
 0x3df   :  { %v1565_v62 = vpop.f32.mrb[73].mxu0 }
 0x3e0   :  { %v1566_v26 = vadd.f32 %v1565_v62, %v1564_v55  ;;  %v1567_v5 = vpop.f32.mrb[74].mxu0  ;;  %1602 = vmatprep.subr.bf16.mxu1 %v837_v18 }
 0x3e1   :  { %v1568_v35 = vpop.f32.mrb[75].mxu0  ;;  %1603 = vmatpush3.bf16.msra.mxu1 %v3117_v51 }
 0x3e2   :  { %v1569_v37 = vadd.f32 %v1568_v35, %v1567_v5  ;;  %v782_v13 = vadd.f32 %v1566_v26, %v2274_v57  ;;  %v3119_v35 = vpack.c.bf16 %v2566_v20, %v2563_v9 }
 0x3e4   :  { %v785_v30 = vadd.f32 %v1569_v37, %v2277_v34 }
 0x3e6   :  { %v1570_v63 = vpop.f32.mrb[76].mxu0  ;;  %v838_v43 = vpack.c.bf16 %v785_v30, %v782_v13 }
 0x3e7   :  { %v1571_v56 = vpop.f32.mrb[77].mxu0 }
 0x3e8   :  { %v1572_v54 = vadd.f32 %v1571_v56, %v1570_v63  ;;  %v1573_v19 = vpop.f32.mrb[78].mxu0  ;;  %1604 = vmatprep.subr.bf16.mxu1 %v838_v43 }
 0x3e9   :  { %v1574_v32 = vpop.f32.mrb[79].mxu0  ;;  %1605 = vmatpush3.bf16.msra.mxu1 %v3118_v29 }
 0x3ea   :  { %v1575_v60 = vadd.f32 %v1574_v32, %v1573_v19  ;;  %v790_v46 = vadd.f32 %v1572_v54, %v2290_v47  ;;  %v3120_v54 = vpack.c.bf16 %v2574_v17, %v2571_v45 }
 0x3ec   :  { %v793_v59 = vadd.f32 %v1575_v60, %v2293_v4 }
 0x3ee   :  { %v1576_v5 = vpop.f32.mrb[80].mxu0  ;;  %v839_v31 = vpack.c.bf16 %v793_v59, %v790_v46 }
 0x3ef   :  { %v1577_v55 = vpop.f32.mrb[81].mxu0 }
 0x3f0   :  { %v1578_v18 = vadd.f32 %v1577_v55, %v1576_v5  ;;  %v1579_v62 = vpop.f32.mrb[82].mxu0  ;;  %1606 = vmatprep.subr.bf16.mxu1 %v839_v31  ;;  %v3121_v31 = vpack.c.bf16 %v2582_v0, %v2579_v36 }
 0x3f1   :  { %v1580_v26 = vpop.f32.mrb[83].mxu0  ;;  %1607 = vmatpush3.bf16.msra.mxu1 %v3119_v35 }
 0x3f2   :  { %v1581_v51 = vadd.f32 %v1580_v26, %v1579_v62  ;;  %v798_v6 = vadd.f32 %v1578_v18, %v2306_v10 }
 0x3f4   :  { %v801_v38 = vadd.f32 %v1581_v51, %v2309_v42 }
 0x3f6   :  { %v1582_v37 = vpop.f32.mrb[84].mxu0  ;;  %v840_v13 = vpack.c.bf16 %v801_v38, %v798_v6  ;;  %v3122_v38 = vpack.c.bf16 %v2590_v33, %v2587_v27  ;;  %v2648_v27 = vld [vmem:[#allocation2 + $0x10] ss:$8 sps:$4 sm:$0xff]   ;;  %v2651_v33 = vld [vmem:[#allocation2 + $0x24] ss:$8 sps:$4 sm:$0xff]  }
 0x3f7   :  { %v1583_v30 = vpop.f32.mrb[85].mxu0 }
 0x3f8   :  { %v1584_v63 = vadd.f32 %v1583_v30, %v1582_v37  ;;  %v1585_v43 = vpop.f32.mrb[86].mxu0  ;;  %1608 = vmatprep.subr.bf16.mxu1 %v840_v13  ;;  %v3123_v30 = vpack.c.bf16 %v2598_v58, %v2595_v52  ;;  %v2657_v52 = vld [vmem:[#allocation2 + $0x34] ss:$8 sps:$4 sm:$0xff]   ;;  %v2660_v58 = vld [vmem:[#allocation2 + $0x30] ss:$8 sps:$4 sm:$0xff]  }
 0x3f9   :  { %v1586_v56 = vpop.f32.mrb[87].mxu0  ;;  %1609 = vmatpush3.bf16.msra.mxu1 %v3120_v54  ;;  %v2663_v54 = vld [vmem:[#allocation2 + $0x44] ss:$8 sps:$4 sm:$0xff]  }
 0x3fa   :  { %v1587_v19 = vadd.f32 %v1586_v56, %v1585_v43  ;;  %v806_v9 = vadd.f32 %v1584_v63, %v2322_v16  ;;  %v2642_v63 = vld [vmem:[#allocation2] ss:$8 sps:$4 sm:$0xff]   ;;  %v2645_v43 = vld [vmem:[#allocation2 + $0x14] ss:$8 sps:$4 sm:$0xff]  }
 0x3fb   :  { %v2654_v56 = vld [vmem:[#allocation2 + $0x20] ss:$8 sps:$4 sm:$0xff]  }
 0x3fc   :  { %v809_v20 = vadd.f32 %v1587_v19, %v2325_v2  ;;  %v2666_v19 = vld [vmem:[#allocation2 + $0x40] ss:$8 sps:$4 sm:$0xff]  }
 0x3fe   :  { %v1588_v32 = vpop.f32.mrb[88].mxu0  ;;  %v841_v29 = vpack.c.bf16 %v809_v20, %v806_v9  ;;  %v2669_v9 = vld [vmem:[#allocation2 + $0x54] ss:$8 sps:$4 sm:$0xff]   ;;  %v2672_v20 = vld [vmem:[#allocation2 + $0x50] ss:$8 sps:$4 sm:$0xff]  }
 0x3ff   :  { %v1589_v60 = vpop.f32.mrb[89].mxu0 }
 0x400   :  { %v1590_v46 = vadd.f32 %v1589_v60, %v1588_v32  ;;  %v1591_v59 = vpop.f32.mrb[90].mxu0  ;;  %1610 = vmatprep.subr.bf16.mxu1 %v841_v29  ;;  %v2675_v32 = vld [vmem:[#allocation2 + $0x64] ss:$8 sps:$4 sm:$0xff]   ;;  %v2678_v29 = vld [vmem:[#allocation2 + $0x60] ss:$8 sps:$4 sm:$0xff]  }
 0x401   :  { %v1592_v5 = vpop.f32.mrb[91].mxu0  ;;  %1611 = vmatpush3.bf16.msra.mxu1 %v3121_v31  ;;  %v2681_v60 = vld [vmem:[#allocation2 + $0x74] ss:$8 sps:$4 sm:$0xff]   ;;  %v2694_v31 = vld [vmem:[#allocation2 + $0x90] ss:$8 sps:$4 sm:$0xff]  }
 0x402   :  { %v1593_v55 = vadd.f32 %v1592_v5, %v1591_v59  ;;  %v814_v45 = vadd.f32 %v1590_v46, %v2338_v22  ;;  %v2684_v46 = vld [vmem:[#allocation2 + $0x70] ss:$8 sps:$4 sm:$0xff]   ;;  %v2688_v59 = vld [vmem:[#allocation2 + $0x80] ss:$8 sps:$4 sm:$0xff]   ;;  %v2691_v5 = vld [vmem:[#allocation2 + $0x94] ss:$8 sps:$4 sm:$0xff]  }
 0x403   :  { %3124 = vst [vmem:[#allocation25_spill] sm:$0xff] %v2688_v59  ;;  %3125 = vst [vmem:[#allocation27_spill] sm:$0xff] %v2691_v5 }
 0x404   :  { %v817_v17 = vadd.f32 %v1593_v55, %v2341_v1  ;;  %3126 = vst [vmem:[#allocation29_spill] sm:$0xff] %v2694_v31  ;;  %v2697_v55 = vld [vmem:[#allocation2 + $0xa4] ss:$8 sps:$4 sm:$0xff]  }
 0x405   :  { %3127 = vst [vmem:[#allocation12_spill] sm:$0xff] %v2697_v55 }
 0x406   :  { %v1594_v18 = vpop.f32.mrb[92].mxu0  ;;  %v842_v62 = vpack.c.bf16 %v817_v17, %v814_v45  ;;  %v2700_v45 = vld [vmem:[#allocation2 + $0xa0] ss:$8 sps:$4 sm:$0xff]   ;;  %v2703_v17 = vld [vmem:[#allocation2 + $0xb4] ss:$8 sps:$4 sm:$0xff]  }
 0x407   :  { %v1595_v26 = vpop.f32.mrb[93].mxu0  ;;  %3128 = vst [vmem:[#allocation13_spill] sm:$0xff] %v2700_v45  ;;  %3129 = vst [vmem:[#allocation11_spill] sm:$0xff] %v2703_v17 }
 0x408   :  { %v1596_v35 = vadd.f32 %v1595_v26, %v1594_v18  ;;  %v1597_v51 = vpop.f32.mrb[94].mxu0  ;;  %1612 = vmatprep.subr.bf16.mxu1 %v842_v62  ;;  %v2706_v18 = vld [vmem:[#allocation2 + $0xb0] ss:$8 sps:$4 sm:$0xff]   ;;  %v2709_v62 = vld [vmem:[#allocation2 + $0xc4] ss:$8 sps:$4 sm:$0xff]  }
 0x409   :  { %v1598_v6 = vpop.f32.mrb[95].mxu0  ;;  %1613 = vmatpush3.bf16.msra.mxu1 %v3122_v38  ;;  %3130 = vst [vmem:[#allocation14_spill] sm:$0xff] %v2706_v18  ;;  %3131 = vst [vmem:[#allocation15_spill] sm:$0xff] %v2709_v62  ;;  %v2712_v26 = vld [vmem:[#allocation2 + $0xc0] ss:$8 sps:$4 sm:$0xff]  }
 0x40a   :  { %v1599_v37 = vadd.f32 %v1598_v6, %v1597_v51  ;;  %v822_v36 = vadd.f32 %v1596_v35, %v2354_v28  ;;  %3132 = vst [vmem:[#allocation16_spill] sm:$0xff] %v2712_v26  ;;  %v2715_v35 = vld [vmem:[#allocation2 + $0xd4] ss:$8 sps:$4 sm:$0xff]   ;;  %v2718_v51 = vld [vmem:[#allocation2 + $0xd0] ss:$8 sps:$4 sm:$0xff]  }
 0x40b   :  { %3133 = vst [vmem:[#allocation17_spill] sm:$0xff] %v2715_v35  ;;  %3134 = vst [vmem:[#allocation18_spill] sm:$0xff] %v2718_v51  ;;  %v2721_v6 = vld [vmem:[#allocation2 + $0xe4] ss:$8 sps:$4 sm:$0xff]   ;;  %v2724_v38 = vld [vmem:[#allocation2 + $0xe0] ss:$8 sps:$4 sm:$0xff]  }
 0x40c   :  { %v825_v0 = vadd.f32 %v1599_v37, %v2357_v8  ;;  %3135 = vst [vmem:[#allocation19_spill] sm:$0xff] %v2721_v6  ;;  %3136 = vst [vmem:[#allocation20_spill] sm:$0xff] %v2724_v38  ;;  %v2727_v37 = vld [vmem:[#allocation2 + $0xf4] ss:$8 sps:$4 sm:$0xff]  }
 0x40d   :  { %3137 = vst [vmem:[#allocation21_spill] sm:$0xff] %v2727_v37 }
 0x40e   :  { %v843_v13 = vpack.c.bf16 %v825_v0, %v822_v36  ;;  %v2730_v36 = vld [vmem:[#allocation2 + $0xf0] ss:$8 sps:$4 sm:$0xff]  }
 0x40f   :  { %3138 = vst [vmem:[#allocation22_spill] sm:$0xff] %v2730_v36 }
 0x410   :  { %1614 = vmatprep.subr.bf16.mxu1 %v843_v13 }
 0x411   :  { %1615 = vmatpush3.bf16.msra.mxu1 %v3123_v30 }
 0x414   :  { %877 = vmatmul.mubr.bf16.vlgmr.msra.gmra.mrb[96].mxu1 %v2642_v63 }
 0x415   :  { %884 = vmatprep.mubr.bf16.mxu1 %v2645_v43 }
 0x41c   :  { %885 = vmatmul.mubr.bf16.gmra.mrb[100].mxu1 %v2648_v27 }
 0x41d   :  { %892 = vmatprep.mubr.bf16.mxu1 %v2651_v33 }
 0x424   :  { %893 = vmatmul.mubr.bf16.gmra.mrb[104].mxu1 %v2654_v56 }
 0x425   :  { %900 = vmatprep.mubr.bf16.mxu1 %v2657_v52 }
 0x42c   :  { %901 = vmatmul.mubr.bf16.gmra.mrb[108].mxu1 %v2660_v58 }
 0x42d   :  { %908 = vmatprep.mubr.bf16.mxu1 %v2663_v54 }
 0x434   :  { %909 = vmatmul.mubr.bf16.gmra.mrb[112].mxu1 %v2666_v19 }
 0x435   :  { %916 = vmatprep.mubr.bf16.mxu1 %v2669_v9 }
 0x43c   :  { %917 = vmatmul.mubr.bf16.gmra.mrb[116].mxu1 %v2672_v20 }
 0x43d   :  { %924 = vmatprep.mubr.bf16.mxu1 %v2675_v32 }
 0x444   :  { %925 = vmatmul.mubr.bf16.gmra.mrb[120].mxu1 %v2678_v29 }
 0x445   :  { %932 = vmatprep.mubr.bf16.mxu1 %v2681_v60 }
 0x44c   :  { %933 = vmatmul.mubr.bf16.gmra.mrb[124].mxu1 %v2684_v46 }
 0x44d   :  { %940 = vmatprep.mubr.bf16.mxu1 %v2520_v50 }
 0x454   :  { %941 = vmatmul.mubr.bf16.gmra.mrb[128].mxu1 %v2688_v59 }
 0x455   :  { %948 = vmatprep.mubr.bf16.mxu1 %v2691_v5 }
 0x45c   :  { %949 = vmatmul.mubr.bf16.gmra.mrb[132].mxu1 %v2694_v31 }
 0x45d   :  { %956 = vmatprep.mubr.bf16.mxu1 %v2697_v55 }
 0x464   :  { %957 = vmatmul.mubr.bf16.gmra.mrb[136].mxu1 %v2700_v45 }
 0x465   :  { %964 = vmatprep.mubr.bf16.mxu1 %v2703_v17 }
 0x46c   :  { %965 = vmatmul.mubr.bf16.gmra.mrb[140].mxu1 %v2706_v18 }
 0x46d   :  { %972 = vmatprep.mubr.bf16.mxu1 %v2709_v62 }
 0x474   :  { %973 = vmatmul.mubr.bf16.gmra.mrb[144].mxu1 %v2712_v26 }
 0x475   :  { %980 = vmatprep.mubr.bf16.mxu1 %v2715_v35 }
 0x47c   :  { %981 = vmatmul.mubr.bf16.gmra.mrb[148].mxu1 %v2718_v51 }
 0x47d   :  { %988 = vmatprep.mubr.bf16.mxu1 %v2721_v6 }
 0x484   :  { %989 = vmatmul.mubr.bf16.gmra.mrb[152].mxu1 %v2724_v38 }
 0x485   :  { %996 = vmatprep.mubr.bf16.mxu1 %v2727_v37 }
 0x48c   :  { %997 = vmatmul.mubr.bf16.gmra.mrb[156].mxu1 %v2730_v36 }
 0x4e7   :  { %v1616_v0 = vpop.f32.mrb[96].mxu1 }
 0x4e8   :  { %v1617_v13 = vpop.f32.mrb[97].mxu1 }
 0x4e9   :  { %v1618_v30 = vadd.f32 %v1617_v13, %v1616_v0  ;;  %v1619_v51 = vpop.f32.mrb[98].mxu1 }
 0x4ea   :  { %v1620_v35 = vpop.f32.mrb[99].mxu1 }
 0x4eb   :  { %v1621_v26 = vadd.f32 %v1620_v35, %v1619_v51  ;;  %v2734_v6 = vadd.f32 %v1618_v30, %v3099_v24 }
 0x4ed   :  { %v2737_v62 = vadd.f32 %v1621_v26, %v3100_v40 }
 0x4ef   :  { %v1622_v37 = vpop.f32.mrb[100].mxu1 }
 0x4f0   :  { %v1623_v18 = vpop.f32.mrb[101].mxu1 }
 0x4f1   :  { %v1624_v17 = vadd.f32 %v1623_v18, %v1622_v37  ;;  %v1625_v45 = vpop.f32.mrb[102].mxu1 }
 0x4f2   :  { %v1626_v36 = vpop.f32.mrb[103].mxu1 }
 0x4f3   :  { %v1627_v55 = vadd.f32 %v1626_v36, %v1625_v45  ;;  %v2742_v0 = vadd.f32 %v1624_v17, %v3101_v7 }
 0x4f5   :  { %v2745_v35 = vadd.f32 %v1627_v55, %v3102_v23 }
 0x4f7   :  { %v1628_v26 = vpop.f32.mrb[104].mxu1 }
 0x4f8   :  { %v1629_v13 = vpop.f32.mrb[105].mxu1 }
 0x4f9   :  { %v1630_v30 = vadd.f32 %v1629_v13, %v1628_v26  ;;  %v1631_v40 = vpop.f32.mrb[106].mxu1 }
 0x4fa   :  { %v1632_v38 = vpop.f32.mrb[107].mxu1 }
 0x4fb   :  { %v1633_v24 = vadd.f32 %v1632_v38, %v1631_v40  ;;  %v2750_v18 = vadd.f32 %v1630_v30, %v3103_v49 }
 0x4fd   :  { %v2753_v45 = vadd.f32 %v1633_v24, %v3104_v61 }
 0x4ff   :  { %v1634_v55 = vpop.f32.mrb[108].mxu1 }
 0x500   :  { %v1635_v37 = vpop.f32.mrb[109].mxu1 }
 0x501   :  { %v1636_v36 = vadd.f32 %v1635_v37, %v1634_v55  ;;  %v1637_v23 = vpop.f32.mrb[110].mxu1 }
 0x502   :  { %v1638_v51 = vpop.f32.mrb[111].mxu1 }
 0x503   :  { %v1639_v7 = vadd.f32 %v1638_v51, %v1637_v23  ;;  %v2758_v26 = vadd.f32 %v1636_v36, %v3105_v3 }
 0x505   :  { %v2761_v40 = vadd.f32 %v1639_v7, %v3106_v14 }
 0x507   :  { %v1640_v24 = vpop.f32.mrb[112].mxu1 }
 0x508   :  { %v1641_v13 = vpop.f32.mrb[113].mxu1 }
 0x509   :  { %v1642_v30 = vadd.f32 %v1641_v13, %v1640_v24  ;;  %v1643_v61 = vpop.f32.mrb[114].mxu1 }
 0x50a   :  { %v1644_v17 = vpop.f32.mrb[115].mxu1 }
 0x50b   :  { %v1645_v49 = vadd.f32 %v1644_v17, %v1643_v61  ;;  %v2766_v55 = vadd.f32 %v1642_v30, %v3107_v53 }
 0x50d   :  { %v2769_v23 = vadd.f32 %v1645_v49, %v3108_v44 }
 0x50f   :  { %v1646_v7 = vpop.f32.mrb[116].mxu1 }
 0x510   :  { %v1647_v37 = vpop.f32.mrb[117].mxu1 }
 0x511   :  { %v1648_v36 = vadd.f32 %v1647_v37, %v1646_v7  ;;  %v1649_v14 = vpop.f32.mrb[118].mxu1 }
 0x512   :  { %v1650_v38 = vpop.f32.mrb[119].mxu1 }
 0x513   :  { %v1651_v3 = vadd.f32 %v1650_v38, %v1649_v14  ;;  %v2774_v24 = vadd.f32 %v1648_v36, %v3109_v11 }
 0x515   :  { %v2777_v61 = vadd.f32 %v1651_v3, %v3110_v48 }
 0x517   :  { %v1652_v49 = vpop.f32.mrb[120].mxu1 }
 0x518   :  { %v1653_v13 = vpop.f32.mrb[121].mxu1 }
 0x519   :  { %v1654_v30 = vadd.f32 %v1653_v13, %v1652_v49  ;;  %v1655_v44 = vpop.f32.mrb[122].mxu1  ;;  %v3139_v13 = vld [vmem:[#allocation47_spill] sm:$0xff] }
 0x51a   :  { %v1656_v51 = vpop.f32.mrb[123].mxu1 }
 0x51b   :  { %v1657_v53 = vadd.f32 %v1656_v51, %v1655_v44  ;;  %v2782_v7 = vadd.f32 %v1654_v30, %v3111_v41  ;;  %v3141_v51 = vpack.c.bf16 %v2737_v62, %v2734_v6 }
 0x51d   :  { %v2785_v14 = vadd.f32 %v1657_v53, %v3112_v21 }
 0x51f   :  { %v1658_v3 = vpop.f32.mrb[124].mxu1 }
 0x520   :  { %v1659_v37 = vpop.f32.mrb[125].mxu1 }
 0x521   :  { %v1660_v36 = vadd.f32 %v1659_v37, %v1658_v3  ;;  %v1661_v48 = vpop.f32.mrb[126].mxu1  ;;  %v3140_v37 = vld [vmem:[#allocation31_spill] sm:$0xff] }
 0x522   :  { %v1662_v17 = vpop.f32.mrb[127].mxu1 }
 0x523   :  { %v1663_v11 = vadd.f32 %v1662_v17, %v1661_v48  ;;  %v2790_v49 = vadd.f32 %v1660_v36, %v3113_v15 }
 0x525   :  { %v2793_v44 = vadd.f32 %v1663_v11, %v3139_v13 }
 0x527   :  { %v1664_v53 = vpop.f32.mrb[128].mxu1 }
 0x528   :  { %v1665_v30 = vpop.f32.mrb[129].mxu1 }
 0x529   :  { %v1666_v21 = vadd.f32 %v1665_v30, %v1664_v53  ;;  %v1667_v41 = vpop.f32.mrb[130].mxu1 }
 0x52a   :  { %v1668_v38 = vpop.f32.mrb[131].mxu1 }
 0x52b   :  { %v1669_v31 = vadd.f32 %v1668_v38, %v1667_v41  ;;  %v943_v3 = vadd.f32 %v1666_v21, %v2242_v39 }
 0x52d   :  { %v946_v5 = vadd.f32 %v1669_v31, %v3140_v37 }
 0x52f   :  { %v1670_v48 = vpop.f32.mrb[132].mxu1  ;;  %v1013_v17 = vpack.c.bf16 %v946_v5, %v943_v3  ;;  %v3142_v3 = vpack.c.bf16 %v2745_v35, %v2742_v0 }
 0x530   :  { %v1671_v36 = vpop.f32.mrb[133].mxu1 }
 0x531   :  { %v1672_v15 = vadd.f32 %v1671_v36, %v1670_v48  ;;  %v1673_v59 = vpop.f32.mrb[134].mxu1  ;;  %1712 = vmatprep.subr.bf16.mxu0 %v1013_v17 }
 0x532   :  { %v1674_v11 = vpop.f32.mrb[135].mxu1  ;;  %1713 = vmatpush3.bf16.msra.mxu0 %v3141_v51 }
 0x533   :  { %v1675_v13 = vadd.f32 %v1674_v11, %v1673_v59  ;;  %v951_v53 = vadd.f32 %v1672_v15, %v2258_v12  ;;  %v3143_v11 = vpack.c.bf16 %v2753_v45, %v2750_v18 }
 0x535   :  { %v954_v41 = vadd.f32 %v1675_v13, %v2261_v25 }
 0x537   :  { %v1676_v38 = vpop.f32.mrb[136].mxu1  ;;  %v1014_v21 = vpack.c.bf16 %v954_v41, %v951_v53 }
 0x538   :  { %v1677_v30 = vpop.f32.mrb[137].mxu1 }
 0x539   :  { %v1678_v31 = vadd.f32 %v1677_v30, %v1676_v38  ;;  %v1679_v37 = vpop.f32.mrb[138].mxu1  ;;  %1714 = vmatprep.subr.bf16.mxu0 %v1014_v21 }
 0x53a   :  { %v1680_v5 = vpop.f32.mrb[139].mxu1  ;;  %1715 = vmatpush3.bf16.msra.mxu0 %v3142_v3 }
 0x53b   :  { %v1681_v48 = vadd.f32 %v1680_v5, %v1679_v37  ;;  %v959_v62 = vadd.f32 %v1678_v31, %v2274_v57  ;;  %v3144_v5 = vpack.c.bf16 %v2761_v40, %v2758_v26 }
 0x53d   :  { %v962_v59 = vadd.f32 %v1681_v48, %v2277_v34 }
 0x53f   :  { %v1682_v6 = vpop.f32.mrb[140].mxu1  ;;  %v1015_v15 = vpack.c.bf16 %v962_v59, %v959_v62 }
 0x540   :  { %v1683_v51 = vpop.f32.mrb[141].mxu1 }
 0x541   :  { %v1684_v13 = vadd.f32 %v1683_v51, %v1682_v6  ;;  %v1685_v17 = vpop.f32.mrb[142].mxu1  ;;  %1716 = vmatprep.subr.bf16.mxu0 %v1015_v15 }
 0x542   :  { %v1686_v36 = vpop.f32.mrb[143].mxu1  ;;  %1717 = vmatpush3.bf16.msra.mxu0 %v3143_v11 }
 0x543   :  { %v1687_v53 = vadd.f32 %v1686_v36, %v1685_v17  ;;  %v967_v0 = vadd.f32 %v1684_v13, %v2290_v47  ;;  %v3145_v13 = vpack.c.bf16 %v2769_v23, %v2766_v55 }
 0x545   :  { %v970_v35 = vadd.f32 %v1687_v53, %v2293_v4 }
 0x547   :  { %v1688_v37 = vpop.f32.mrb[144].mxu1  ;;  %v1016_v41 = vpack.c.bf16 %v970_v35, %v967_v0 }
 0x548   :  { %v1689_v38 = vpop.f32.mrb[145].mxu1 }
 0x549   :  { %v1690_v21 = vadd.f32 %v1689_v38, %v1688_v37  ;;  %v1691_v30 = vpop.f32.mrb[146].mxu1  ;;  %1718 = vmatprep.subr.bf16.mxu0 %v1016_v41  ;;  %v3146_v41 = vpack.c.bf16 %v2777_v61, %v2774_v24 }
 0x54a   :  { %v1692_v31 = vpop.f32.mrb[147].mxu1  ;;  %1719 = vmatpush3.bf16.msra.mxu0 %v3144_v5 }
 0x54b   :  { %v1693_v3 = vadd.f32 %v1692_v31, %v1691_v30  ;;  %v975_v18 = vadd.f32 %v1690_v21, %v2306_v10 }
 0x54d   :  { %v978_v45 = vadd.f32 %v1693_v3, %v2309_v42 }
 0x54f   :  { %v1694_v48 = vpop.f32.mrb[148].mxu1  ;;  %v1017_v62 = vpack.c.bf16 %v978_v45, %v975_v18  ;;  %v3147_v45 = vpack.c.bf16 %v2785_v14, %v2782_v7 }
 0x550   :  { %v1695_v59 = vpop.f32.mrb[149].mxu1 }
 0x551   :  { %v1696_v6 = vadd.f32 %v1695_v59, %v1694_v48  ;;  %v1697_v15 = vpop.f32.mrb[150].mxu1  ;;  %1720 = vmatprep.subr.bf16.mxu0 %v1017_v62  ;;  %v3148_v59 = vpack.c.bf16 %v2793_v44, %v2790_v49 }
 0x552   :  { %v1698_v51 = vpop.f32.mrb[151].mxu1  ;;  %1721 = vmatpush3.bf16.msra.mxu0 %v3145_v13  ;;  %v3165_v13 = vld [vmem:[#allocation33_spill] sm:$0xff] }
 0x553   :  { %v1699_v17 = vadd.f32 %v1698_v51, %v1697_v15  ;;  %v983_v26 = vadd.f32 %v1696_v6, %v2322_v16  ;;  %v3164_v6 = vld [vmem:[#allocation32_spill] sm:$0xff] }
 0x555   :  { %v986_v40 = vadd.f32 %v1699_v17, %v2325_v2 }
 0x557   :  { %v1700_v36 = vpop.f32.mrb[152].mxu1  ;;  %v1018_v11 = vpack.c.bf16 %v986_v40, %v983_v26 }
 0x558   :  { %v1701_v53 = vpop.f32.mrb[153].mxu1 }
 0x559   :  { %v1702_v0 = vadd.f32 %v1701_v53, %v1700_v36  ;;  %v1703_v35 = vpop.f32.mrb[154].mxu1  ;;  %1722 = vmatprep.subr.bf16.mxu0 %v1018_v11 }
 0x55a   :  { %v1704_v37 = vpop.f32.mrb[155].mxu1  ;;  %1723 = vmatpush3.bf16.msra.mxu0 %v3146_v41  ;;  %v3167_v41 = vld [vmem:[#allocation35_spill] sm:$0xff] }
 0x55b   :  { %v1705_v38 = vadd.f32 %v1704_v37, %v1703_v35  ;;  %v991_v55 = vadd.f32 %v1702_v0, %v2338_v22  ;;  %v3166_v0 = vld [vmem:[#allocation34_spill] sm:$0xff] }
 0x55d   :  { %v994_v23 = vadd.f32 %v1705_v38, %v2341_v1 }
 0x55f   :  { %v1706_v21 = vpop.f32.mrb[156].mxu1  ;;  %v1019_v30 = vpack.c.bf16 %v994_v23, %v991_v55 }
 0x560   :  { %v1707_v31 = vpop.f32.mrb[157].mxu1 }
 0x561   :  { %v1708_v5 = vadd.f32 %v1707_v31, %v1706_v21  ;;  %v1709_v3 = vpop.f32.mrb[158].mxu1  ;;  %1724 = vmatprep.subr.bf16.mxu0 %v1019_v30 }
 0x562   :  { %v1710_v18 = vpop.f32.mrb[159].mxu1  ;;  %1725 = vmatpush3.bf16.msra.mxu0 %v3147_v45  ;;  %v3169_v45 = vld [vmem:[#allocation37_spill] sm:$0xff] }
 0x563   :  { %v1711_v48 = vadd.f32 %v1710_v18, %v1709_v3  ;;  %v999_v24 = vadd.f32 %v1708_v5, %v2354_v28  ;;  %v3168_v5 = vld [vmem:[#allocation36_spill] sm:$0xff] }
 0x565   :  { %v1002_v61 = vadd.f32 %v1711_v48, %v2357_v8 }
 0x567   :  { %v1020_v62 = vpack.c.bf16 %v1002_v61, %v999_v24 }
 0x569   :  { %1726 = vmatprep.subr.bf16.mxu0 %v1020_v62 }
 0x56a   :  { %1727 = vmatpush3.bf16.msra.mxu0 %v3148_v59 }
 0x56d   :  { %1054 = vmatmul.mubr.bf16.vlgmr.msra.gmra.mrb[96].mxu0 %v2642_v63  ;;  %v3149_v63 = vld [vmem:[#allocation25_spill] sm:$0xff] }
 0x56e   :  { %1061 = vmatprep.mubr.bf16.mxu0 %v2645_v43  ;;  %v3150_v43 = vld [vmem:[#allocation27_spill] sm:$0xff] }
 0x575   :  { %1062 = vmatmul.mubr.bf16.gmra.mrb[100].mxu0 %v2648_v27  ;;  %v3151_v27 = vld [vmem:[#allocation29_spill] sm:$0xff] }
 0x576   :  { %1069 = vmatprep.mubr.bf16.mxu0 %v2651_v33  ;;  %v3152_v33 = vld [vmem:[#allocation12_spill] sm:$0xff] }
 0x57d   :  { %1070 = vmatmul.mubr.bf16.gmra.mrb[104].mxu0 %v2654_v56  ;;  %v3153_v56 = vld [vmem:[#allocation13_spill] sm:$0xff] }
 0x57e   :  { %1077 = vmatprep.mubr.bf16.mxu0 %v2657_v52  ;;  %v3154_v52 = vld [vmem:[#allocation11_spill] sm:$0xff] }
 0x585   :  { %1078 = vmatmul.mubr.bf16.gmra.mrb[108].mxu0 %v2660_v58  ;;  %v3155_v58 = vld [vmem:[#allocation14_spill] sm:$0xff] }
 0x586   :  { %1085 = vmatprep.mubr.bf16.mxu0 %v2663_v54  ;;  %v3156_v54 = vld [vmem:[#allocation15_spill] sm:$0xff] }
 0x58d   :  { %1086 = vmatmul.mubr.bf16.gmra.mrb[112].mxu0 %v2666_v19  ;;  %v3157_v19 = vld [vmem:[#allocation16_spill] sm:$0xff] }
 0x58e   :  { %1093 = vmatprep.mubr.bf16.mxu0 %v2669_v9  ;;  %v3158_v9 = vld [vmem:[#allocation17_spill] sm:$0xff] }
 0x595   :  { %1094 = vmatmul.mubr.bf16.gmra.mrb[116].mxu0 %v2672_v20  ;;  %v3160_v20 = vld [vmem:[#allocation19_spill] sm:$0xff] }
 0x596   :  { %1101 = vmatprep.mubr.bf16.mxu0 %v2675_v32  ;;  %v3161_v32 = vld [vmem:[#allocation20_spill] sm:$0xff] }
 0x59d   :  { %1102 = vmatmul.mubr.bf16.gmra.mrb[120].mxu0 %v2678_v29  ;;  %v3162_v29 = vld [vmem:[#allocation21_spill] sm:$0xff] }
 0x59e   :  { %1109 = vmatprep.mubr.bf16.mxu0 %v2681_v60  ;;  %v3163_v60 = vld [vmem:[#allocation22_spill] sm:$0xff] }
 0x5a5   :  { %1110 = vmatmul.mubr.bf16.gmra.mrb[124].mxu0 %v2684_v46 }
 0x5a6   :  { %1117 = vmatprep.mubr.bf16.mxu0 %v2520_v50  ;;  %v3159_v50 = vld [vmem:[#allocation18_spill] sm:$0xff] }
 0x5ad   :  { %1118 = vmatmul.mubr.bf16.gmra.mrb[128].mxu0 %v3149_v63 }
 0x5ae   :  { %1125 = vmatprep.mubr.bf16.mxu0 %v3150_v43  ;;  %v3170_v43 = vld [vmem:[#allocation38_spill] sm:$0xff] }
 0x5b5   :  { %1126 = vmatmul.mubr.bf16.gmra.mrb[132].mxu0 %v3151_v27 }
 0x5b6   :  { %1133 = vmatprep.mubr.bf16.mxu0 %v3152_v33 }
 0x5bd   :  { %1134 = vmatmul.mubr.bf16.gmra.mrb[136].mxu0 %v3153_v56  ;;  %v3171_v56 = vld [vmem:[#allocation39_spill] sm:$0xff] }
 0x5be   :  { %1141 = vmatprep.mubr.bf16.mxu0 %v3154_v52 }
 0x5c5   :  { %1142 = vmatmul.mubr.bf16.gmra.mrb[140].mxu0 %v3155_v58 }
 0x5c6   :  { %1149 = vmatprep.mubr.bf16.mxu0 %v3156_v54 }
 0x5cd   :  { %1150 = vmatmul.mubr.bf16.gmra.mrb[144].mxu0 %v3157_v19 }
 0x5ce   :  { %1157 = vmatprep.mubr.bf16.mxu0 %v3158_v9 }
 0x5d5   :  { %1158 = vmatmul.mubr.bf16.gmra.mrb[148].mxu0 %v3159_v50 }
 0x5d6   :  { %1165 = vmatprep.mubr.bf16.mxu0 %v3160_v20  ;;  %v3172_v20 = vld [vmem:[#allocation40_spill] sm:$0xff] }
 0x5dd   :  { %1166 = vmatmul.mubr.bf16.gmra.mrb[152].mxu0 %v3161_v32 }
 0x5de   :  { %1173 = vmatprep.mubr.bf16.mxu0 %v3162_v29 }
 0x5e5   :  { %1174 = vmatmul.mubr.bf16.gmra.mrb[156].mxu0 %v3163_v60  ;;  %v3173_v60 = vld [vmem:[#allocation41_spill] sm:$0xff] }
 0x640   :  { %v1728_v46 = vpop.f32.mrb[96].mxu0 }
 0x641   :  { %v1729_v7 = vpop.f32.mrb[97].mxu0 }
 0x642   :  { %v1730_v14 = vadd.f32 %v1729_v7, %v1728_v46  ;;  %v1731_v49 = vpop.f32.mrb[98].mxu0 }
 0x643   :  { %v1732_v44 = vpop.f32.mrb[99].mxu0 }
 0x644   :  { %v1056_v15 = vadd.f32 %v1730_v14, %v3164_v6  ;;  %v1733_v51 = vadd.f32 %v1732_v44, %v1731_v49 }
 0x646   :  { %1182 = vst [vmem:[#allocation7] sm:$0xff] %v1056_v15  ;;  %v1059_v17 = vadd.f32 %v1733_v51, %v3165_v13  ;;  %v3174_v15 = vld [vmem:[#allocation42_spill] sm:$0xff] }
 0x648   :  { %1183 = vst [vmem:[#allocation7 + $0x8] sm:$0xff] %v1059_v17  ;;  %v1734_v26 = vpop.f32.mrb[100].mxu0  ;;  %v3175_v17 = vld [vmem:[#allocation43_spill] sm:$0xff] }
 0x649   :  { %v1735_v40 = vpop.f32.mrb[101].mxu0 }
 0x64a   :  { %v1736_v36 = vadd.f32 %v1735_v40, %v1734_v26  ;;  %v1737_v11 = vpop.f32.mrb[102].mxu0 }
 0x64b   :  { %v1738_v53 = vpop.f32.mrb[103].mxu0 }
 0x64c   :  { %v1064_v35 = vadd.f32 %v1736_v36, %v3166_v0  ;;  %v1739_v37 = vadd.f32 %v1738_v53, %v1737_v11 }
 0x64e   :  { %1184 = vst [vmem:[#allocation7 + $0x10] sm:$0xff] %v1064_v35  ;;  %v1067_v38 = vadd.f32 %v1739_v37, %v3167_v41  ;;  %v3176_v35 = vld [vmem:[#allocation44_spill] sm:$0xff] }
 0x650   :  { %1185 = vst [vmem:[#allocation7 + $0x18] sm:$0xff] %v1067_v38  ;;  %v1740_v55 = vpop.f32.mrb[104].mxu0  ;;  %v3177_v38 = vld [vmem:[#allocation45_spill] sm:$0xff] }
 0x651   :  { %v1741_v23 = vpop.f32.mrb[105].mxu0 }
 0x652   :  { %v1742_v21 = vadd.f32 %v1741_v23, %v1740_v55  ;;  %v1743_v30 = vpop.f32.mrb[106].mxu0 }
 0x653   :  { %v1744_v31 = vpop.f32.mrb[107].mxu0 }
 0x654   :  { %v1072_v3 = vadd.f32 %v1742_v21, %v3168_v5  ;;  %v1745_v18 = vadd.f32 %v1744_v31, %v1743_v30 }
 0x656   :  { %1186 = vst [vmem:[#allocation7 + $0x20] sm:$0xff] %v1072_v3  ;;  %v1075_v48 = vadd.f32 %v1745_v18, %v3169_v45  ;;  %v3178_v3 = vld [vmem:[#allocation46_spill] sm:$0xff] }
 0x658   :  { %1187 = vst [vmem:[#allocation7 + $0x28] sm:$0xff] %v1075_v48  ;;  %v1746_v24 = vpop.f32.mrb[108].mxu0  ;;  %v3179_v48 = vld [vmem:[#allocation47_spill] sm:$0xff] }
 0x659   :  { %v1747_v61 = vpop.f32.mrb[109].mxu0 }
 0x65a   :  { %v1748_v62 = vadd.f32 %v1747_v61, %v1746_v24  ;;  %v1749_v59 = vpop.f32.mrb[110].mxu0 }
 0x65b   :  { %v1750_v63 = vpop.f32.mrb[111].mxu0 }
 0x65c   :  { %v1080_v27 = vadd.f32 %v1748_v62, %v3170_v43  ;;  %v1751_v33 = vadd.f32 %v1750_v63, %v1749_v59 }
 0x65e   :  { %1188 = vst [vmem:[#allocation7 + $0x30] sm:$0xff] %v1080_v27  ;;  %v1083_v52 = vadd.f32 %v1751_v33, %v3171_v56  ;;  %v3180_v56 = vld [vmem:[#allocation31_spill] sm:$0xff] }
 0x660   :  { %1189 = vst [vmem:[#allocation7 + $0x38] sm:$0xff] %v1083_v52  ;;  %v1752_v58 = vpop.f32.mrb[112].mxu0 }
 0x661   :  { %v1753_v54 = vpop.f32.mrb[113].mxu0 }
 0x662   :  { %v1754_v19 = vadd.f32 %v1753_v54, %v1752_v58  ;;  %v1755_v9 = vpop.f32.mrb[114].mxu0 }
 0x663   :  { %v1756_v50 = vpop.f32.mrb[115].mxu0 }
 0x664   :  { %v1088_v32 = vadd.f32 %v1754_v19, %v3172_v20  ;;  %v1757_v29 = vadd.f32 %v1756_v50, %v1755_v9 }
 0x666   :  { %1190 = vst [vmem:[#allocation7 + $0x40] sm:$0xff] %v1088_v32  ;;  %v1091_v46 = vadd.f32 %v1757_v29, %v3173_v60 }
 0x668   :  { %1191 = vst [vmem:[#allocation7 + $0x48] sm:$0xff] %v1091_v46  ;;  %v1758_v7 = vpop.f32.mrb[116].mxu0 }
 0x669   :  { %v1759_v14 = vpop.f32.mrb[117].mxu0 }
 0x66a   :  { %v1760_v49 = vadd.f32 %v1759_v14, %v1758_v7  ;;  %v1761_v44 = vpop.f32.mrb[118].mxu0 }
 0x66b   :  { %v1762_v6 = vpop.f32.mrb[119].mxu0 }
 0x66c   :  { %v1096_v51 = vadd.f32 %v1760_v49, %v3174_v15  ;;  %v1763_v13 = vadd.f32 %v1762_v6, %v1761_v44 }
 0x66e   :  { %1192 = vst [vmem:[#allocation7 + $0x50] sm:$0xff] %v1096_v51  ;;  %v1099_v26 = vadd.f32 %v1763_v13, %v3175_v17 }
 0x670   :  { %1193 = vst [vmem:[#allocation7 + $0x58] sm:$0xff] %v1099_v26  ;;  %v1764_v40 = vpop.f32.mrb[120].mxu0 }
 0x671   :  { %v1765_v36 = vpop.f32.mrb[121].mxu0 }
 0x672   :  { %v1766_v11 = vadd.f32 %v1765_v36, %v1764_v40  ;;  %v1767_v53 = vpop.f32.mrb[122].mxu0 }
 0x673   :  { %v1768_v0 = vpop.f32.mrb[123].mxu0 }
 0x674   :  { %v1104_v37 = vadd.f32 %v1766_v11, %v3176_v35  ;;  %v1769_v41 = vadd.f32 %v1768_v0, %v1767_v53 }
 0x676   :  { %1194 = vst [vmem:[#allocation7 + $0x60] sm:$0xff] %v1104_v37  ;;  %v1107_v55 = vadd.f32 %v1769_v41, %v3177_v38 }
 0x678   :  { %1195 = vst [vmem:[#allocation7 + $0x68] sm:$0xff] %v1107_v55  ;;  %v1770_v23 = vpop.f32.mrb[124].mxu0 }
 0x679   :  { %v1771_v21 = vpop.f32.mrb[125].mxu0 }
 0x67a   :  { %v1772_v30 = vadd.f32 %v1771_v21, %v1770_v23  ;;  %v1773_v31 = vpop.f32.mrb[126].mxu0 }
 0x67b   :  { %v1774_v5 = vpop.f32.mrb[127].mxu0 }
 0x67c   :  { %v1112_v18 = vadd.f32 %v1772_v30, %v3178_v3  ;;  %v1775_v45 = vadd.f32 %v1774_v5, %v1773_v31 }
 0x67e   :  { %1196 = vst [vmem:[#allocation7 + $0x70] sm:$0xff] %v1112_v18  ;;  %v1115_v24 = vadd.f32 %v1775_v45, %v3179_v48 }
 0x680   :  { %1197 = vst [vmem:[#allocation7 + $0x78] sm:$0xff] %v1115_v24  ;;  %v1776_v61 = vpop.f32.mrb[128].mxu0 }
 0x681   :  { %v1777_v62 = vpop.f32.mrb[129].mxu0 }
 0x682   :  { %v1778_v59 = vadd.f32 %v1777_v62, %v1776_v61  ;;  %v1779_v63 = vpop.f32.mrb[130].mxu0 }
 0x683   :  { %v1780_v43 = vpop.f32.mrb[131].mxu0 }
 0x684   :  { %v1120_v27 = vadd.f32 %v1778_v59, %v2242_v39  ;;  %v1781_v33 = vadd.f32 %v1780_v43, %v1779_v63 }
 0x686   :  { %1198 = vst [vmem:[#allocation7 + $0x80] sm:$0xff] %v1120_v27  ;;  %v1123_v52 = vadd.f32 %v1781_v33, %v3180_v56 }
 0x688   :  { %1199 = vst [vmem:[#allocation7 + $0x88] sm:$0xff] %v1123_v52  ;;  %v1782_v58 = vpop.f32.mrb[132].mxu0 }
 0x689   :  { %v1783_v54 = vpop.f32.mrb[133].mxu0 }
 0x68a   :  { %v1784_v19 = vadd.f32 %v1783_v54, %v1782_v58  ;;  %v1785_v9 = vpop.f32.mrb[134].mxu0 }
 0x68b   :  { %v1786_v50 = vpop.f32.mrb[135].mxu0 }
 0x68c   :  { %v1128_v20 = vadd.f32 %v1784_v19, %v2258_v12  ;;  %v1787_v32 = vadd.f32 %v1786_v50, %v1785_v9 }
 0x68e   :  { %1200 = vst [vmem:[#allocation7 + $0x90] sm:$0xff] %v1128_v20  ;;  %v1131_v29 = vadd.f32 %v1787_v32, %v2261_v25 }
 0x690   :  { %1201 = vst [vmem:[#allocation7 + $0x98] sm:$0xff] %v1131_v29  ;;  %v1788_v60 = vpop.f32.mrb[136].mxu0 }
 0x691   :  { %v1789_v46 = vpop.f32.mrb[137].mxu0 }
 0x692   :  { %v1790_v39 = vadd.f32 %v1789_v46, %v1788_v60  ;;  %v1791_v7 = vpop.f32.mrb[138].mxu0 }
 0x693   :  { %v1792_v14 = vpop.f32.mrb[139].mxu0 }
 0x694   :  { %v1136_v49 = vadd.f32 %v1790_v39, %v2274_v57  ;;  %v1793_v44 = vadd.f32 %v1792_v14, %v1791_v7 }
 0x696   :  { %1202 = vst [vmem:[#allocation7 + $0xa0] sm:$0xff] %v1136_v49  ;;  %v1139_v6 = vadd.f32 %v1793_v44, %v2277_v34 }
 0x698   :  { %1203 = vst [vmem:[#allocation7 + $0xa8] sm:$0xff] %v1139_v6  ;;  %v1794_v15 = vpop.f32.mrb[140].mxu0 }
 0x699   :  { %v1795_v51 = vpop.f32.mrb[141].mxu0 }
 0x69a   :  { %v1796_v12 = vadd.f32 %v1795_v51, %v1794_v15  ;;  %v1797_v13 = vpop.f32.mrb[142].mxu0 }
 0x69b   :  { %v1798_v17 = vpop.f32.mrb[143].mxu0 }
 0x69c   :  { %v1144_v25 = vadd.f32 %v1796_v12, %v2290_v47  ;;  %v1799_v26 = vadd.f32 %v1798_v17, %v1797_v13 }
 0x69e   :  { %1204 = vst [vmem:[#allocation7 + $0xb0] sm:$0xff] %v1144_v25  ;;  %v1147_v40 = vadd.f32 %v1799_v26, %v2293_v4 }
 0x6a0   :  { %1205 = vst [vmem:[#allocation7 + $0xb8] sm:$0xff] %v1147_v40  ;;  %v1800_v36 = vpop.f32.mrb[144].mxu0 }
 0x6a1   :  { %v1801_v11 = vpop.f32.mrb[145].mxu0 }
 0x6a2   :  { %v1802_v57 = vadd.f32 %v1801_v11, %v1800_v36  ;;  %v1803_v53 = vpop.f32.mrb[146].mxu0 }
 0x6a3   :  { %v1804_v0 = vpop.f32.mrb[147].mxu0 }
 0x6a4   :  { %v1152_v34 = vadd.f32 %v1802_v57, %v2306_v10  ;;  %v1805_v35 = vadd.f32 %v1804_v0, %v1803_v53 }
 0x6a6   :  { %1206 = vst [vmem:[#allocation7 + $0xc0] sm:$0xff] %v1152_v34  ;;  %v1155_v37 = vadd.f32 %v1805_v35, %v2309_v42 }
 0x6a8   :  { %1207 = vst [vmem:[#allocation7 + $0xc8] sm:$0xff] %v1155_v37  ;;  %v1806_v41 = vpop.f32.mrb[148].mxu0 }
 0x6a9   :  { %v1807_v38 = vpop.f32.mrb[149].mxu0 }
 0x6aa   :  { %v1808_v47 = vadd.f32 %v1807_v38, %v1806_v41  ;;  %v1809_v55 = vpop.f32.mrb[150].mxu0 }
 0x6ab   :  { %v1810_v23 = vpop.f32.mrb[151].mxu0 }
 0x6ac   :  { %v1160_v4 = vadd.f32 %v1808_v47, %v2322_v16  ;;  %v1811_v21 = vadd.f32 %v1810_v23, %v1809_v55 }
 0x6ae   :  { %1208 = vst [vmem:[#allocation7 + $0xd0] sm:$0xff] %v1160_v4  ;;  %v1163_v30 = vadd.f32 %v1811_v21, %v2325_v2 }
 0x6b0   :  { %1209 = vst [vmem:[#allocation7 + $0xd8] sm:$0xff] %v1163_v30  ;;  %v1812_v31 = vpop.f32.mrb[152].mxu0 }
 0x6b1   :  { %v1813_v5 = vpop.f32.mrb[153].mxu0 }
 0x6b2   :  { %v1814_v10 = vadd.f32 %v1813_v5, %v1812_v31  ;;  %v1815_v3 = vpop.f32.mrb[154].mxu0 }
 0x6b3   :  { %v1816_v18 = vpop.f32.mrb[155].mxu0 }
 0x6b4   :  { %v1168_v42 = vadd.f32 %v1814_v10, %v2338_v22  ;;  %v1817_v45 = vadd.f32 %v1816_v18, %v1815_v3 }
 0x6b6   :  { %1210 = vst [vmem:[#allocation7 + $0xe0] sm:$0xff] %v1168_v42  ;;  %v1171_v48 = vadd.f32 %v1817_v45, %v2341_v1 }
 0x6b8   :  { %1211 = vst [vmem:[#allocation7 + $0xe8] sm:$0xff] %v1171_v48  ;;  %v1818_v24 = vpop.f32.mrb[156].mxu0 }
 0x6b9   :  { %v1819_v61 = vpop.f32.mrb[157].mxu0 }
 0x6ba   :  { %v1820_v16 = vadd.f32 %v1819_v61, %v1818_v24  ;;  %v1821_v62 = vpop.f32.mrb[158].mxu0 }
 0x6bb   :  { %v1822_v59 = vpop.f32.mrb[159].mxu0 }
 0x6bc   :  { %v1176_v2 = vadd.f32 %v1820_v16, %v2354_v28  ;;  %v1823_v63 = vadd.f32 %v1822_v59, %v1821_v62 }
 0x6be   :  { %1212 = vst [vmem:[#allocation7 + $0xf0] sm:$0xff] %v1176_v2  ;;  %v1179_v43 = vadd.f32 %v1823_v63, %v2357_v8 }
 0x6c0   :  { %1213 = vst [vmem:[#allocation7 + $0xf8] sm:$0xff] %v1179_v43 }
 0x6c1   :  { %1980 = shalt.err (!%p1977_p6)
}
 0x6c2   :  { %s1981_s10 = scalar_lea.hbm %s2917_s2, 4096 }
 0x6c3   :  { %p1982_p7 = scmp.ne.s32.totalorder %s2917_s2, %s1981_s10  ;;  %p1985_p8 = scmp.lt.u32.totalorder %s1981_s10, %s2917_s2 }
 0x6c5   :  { %p1987_p9 = pnand %p1985_p8, %p1982_p7 }
 0x6c7   :  { %1990 = shalt.err (!%p1987_p9)
}
 0x6c8   :  { %1225 = dma.vmem_to_hbm [thread:$0]  %s1220_s6, 4096, %s2917_s2, [#allocation4], %s1998_s19, %s1998_s19, %s1999_s20  }
 0x6c9   :  { %1995 = dma.done.wait [#allocation4], 4096  }
 0x6ca   :  { %1996 = vsyncadd [#allocation4], 4294963200 }
 0x6cb   :  { %1229 = vsyncpa [#allocation3], 1 }
 0x6cc   :  { %1230 = vsyncpa [#allocation6], 1 }
 0x6cd   :  { %1231 = vsyncpa [#allocation4], 1 }

</bundles_post_ra>
